<compile_context>
chip_gen: v7x
topology: tpu7x:2x2x1
jax: 0.10.0
libtpu: 0.0.40
codegen_flags: <defaults>
</compile_context>

<pallas_src>
import functools

import jax
import jax.numpy as jnp
from jax import lax
from jax.experimental import pallas as pl
from jax.experimental.pallas import tpu as pltpu

EPS = 1e-5


def _round_up(n, m):
    return -(-n // m) * m


def _pad2d(a, rows, cols):
    r, c = a.shape
    if r == rows and c == cols:
        return a
    return jnp.pad(a, ((0, rows - r), (0, cols - c)))


def _pad_rows(a, rows):
    r = a.shape[0]
    if r == rows:
        return a
    return jnp.pad(a, ((0, rows - r), (0, 0)))


def _tm_target():
    # Bigger tiles amortize the ~0.35us per-grid-step overhead.  v5e/v6e have
    # 128 MiB VMEM -> 2048-row tiles; v7x (64 MiB/TC) keeps 1024 so the
    # parallel axes retain enough steps for both TensorCores.
    try:
        if pltpu.get_tpu_info().vmem_capacity_bytes >= (96 << 20):
            return 2048
    except Exception:
        pass
    return 1024


TM_TARGET = _tm_target()


def _tiles_for(m):
    """Pick an M-tile that divides M exactly (no row padding, [:m] slices are
    no-ops); fall back to padding M only if no reasonable divisor exists."""
    if m <= TM_TARGET:
        return m, m                                  # single tile == full dim
    for step in (16, 8):
        start = TM_TARGET - TM_TARGET % step
        for cand in range(start, step - 1, -step):
            if cand < 128:
                break
            if m % cand == 0:
                return cand, m
    tm = TM_TARGET
    return tm, _round_up(m, tm)


def _vmem_limit(per_step_block_bytes):
    # ~2x for double buffering + headroom for compiler scratch; clamped so the
    # request also fits comfortably inside v7x's 64 MiB VMEM per TensorCore.
    return int(min(max(2 * per_step_block_bytes + (4 << 20), 8 << 20), 32 << 20))


# ---------------------------------------------------------------------------
# Pallas kernels
# ---------------------------------------------------------------------------
def _matmul_stats_kernel(p_ref, w_ref, y_ref, sum_ref, ssq_ref):
    """Pass 1 (3x3 convs): y = patches @ W.  Spill y as bf16 and accumulate
    per-channel sum / sum-of-squares into this partition's stats rows."""
    @pl.when(pl.program_id(1) == 0)
    def _():
        sum_ref[...] = jnp.zeros_like(sum_ref)
        ssq_ref[...] = jnp.zeros_like(ssq_ref)

    y = jnp.dot(p_ref[...], w_ref[...], preferred_element_type=jnp.float32)
    y_ref[...] = y.astype(y_ref.dtype)
    sum_ref[...] += jnp.sum(y, axis=0, keepdims=True)    # (1,C) -> bcast (8,C)
    ssq_ref[...] += jnp.sum(y * y, axis=0, keepdims=True)


def _matmul_stats_only_kernel(p_ref, w_ref, sum_ref, ssq_ref):
    """Pass 1 (shortcut conv, small K): stats only, no y spill."""
    @pl.when(pl.program_id(1) == 0)
    def _():
        sum_ref[...] = jnp.zeros_like(sum_ref)
        ssq_ref[...] = jnp.zeros_like(ssq_ref)

    y = jnp.dot(p_ref[...], w_ref[...], preferred_element_type=jnp.float32)
    sum_ref[...] += jnp.sum(y, axis=0, keepdims=True)
    ssq_ref[...] += jnp.sum(y * y, axis=0, keepdims=True)


def _bn_apply_kernel(y_ref, scale_ref, shift_ref, o_ref, *, relu):
    """Pass 2 (3x3 convs): elementwise y*scale + shift (+ReLU) over bf16 y."""
    out = y_ref[...].astype(jnp.float32) * scale_ref[...] + shift_ref[...]
    if relu:
        out = jnp.maximum(out, 0.0)
    o_ref[...] = out.astype(o_ref.dtype)


def _bn_apply_residual_relu_kernel(y_ref, scale_ref, shift_ref, r_ref, o_ref):
    """Pass 2 of the block's second conv, fused with residual add + final ReLU."""
    out = (y_ref[...].astype(jnp.float32) * scale_ref[...] + shift_ref[...]
           + r_ref[...].astype(jnp.float32))
    o_ref[...] = jnp.maximum(out, 0.0).astype(o_ref.dtype)


def _matmul_apply_kernel(p_ref, w_ref, scale_ref, shift_ref, o_ref, *, relu):
    """Pass 2 (shortcut conv): recompute the small-K matmul, apply scale/shift."""
    y = jnp.dot(p_ref[...], w_ref[...], preferred_element_type=jnp.float32)
    out = y * scale_ref[...] + shift_ref[...]
    if relu:
        out = jnp.maximum(out, 0.0)
    o_ref[...] = out.astype(o_ref.dtype)


# ---------------------------------------------------------------------------
# Conv + BN (+ residual/ReLU) wrapper: two tiled pallas_calls
# ---------------------------------------------------------------------------
def conv_bn_pallas(patches, w_mat, gamma_p, beta_p, m_valid, tm, *,
                   relu, residual=None, spill_y=True, out_dtype=jnp.bfloat16):
    """patches: (Mp, K) bf16 (rows beyond m_valid are zero).  w_mat: (K, Cp) bf16.
    gamma/beta: (1, Cp) f32 (padded lanes zero).  residual: optional (Mp, Cp) bf16.
    Returns (Mp, Cp) out_dtype."""
    mp, kdim = patches.shape
    cp = w_mat.shape[1]
    assert mp % tm == 0
    num_tiles = mp // tm
    n_part = 2 if (num_tiles >= 2 and num_tiles % 2 == 0) else 1
    steps = num_tiles // n_part
    flops = 2 * mp * kdim * cp

    # ---- pass 1: matmul (+ bf16 y spill) + per-channel moments -------------
    p_spec1 = pl.BlockSpec((tm, kdim), lambda p, j: (p * steps + j, 0))
    w_spec1 = pl.BlockSpec((kdim, cp), lambda p, j: (0, 0))
    stats_spec = pl.BlockSpec((8, cp), lambda p, j: (p, 0))
    stats_shape = jax.ShapeDtypeStruct((8 * n_part, cp), jnp.float32)

    blk1 = tm * kdim * 2 + kdim * cp * 2 + 2 * 8 * cp * 4
    bytes1 = patches.size * 2 + w_mat.size * 2 + 2 * 8 * n_part * cp * 4
    if spill_y:
        out_shape1 = (jax.ShapeDtypeStruct((mp, cp), jnp.bfloat16),
                      stats_shape, stats_shape)
        out_specs1 = (pl.BlockSpec((tm, cp), lambda p, j: (p * steps + j, 0)),
                      stats_spec, stats_spec)
        kernel1 = _matmul_stats_kernel
        blk1 += tm * cp * 2
        bytes1 += mp * cp * 2
    else:
        out_shape1 = (stats_shape, stats_shape)
        out_specs1 = (stats_spec, stats_spec)
        kernel1 = _matmul_stats_only_kernel

    res1 = pl.pallas_call(
        kernel1,
        out_shape=out_shape1,
        grid=(n_part, steps),
        in_specs=[p_spec1, w_spec1],
        out_specs=out_specs1,
        compiler_params=pltpu.CompilerParams(
            dimension_semantics=("parallel", "arbitrary"),
            vmem_limit_bytes=_vmem_limit(blk1)),
        cost_estimate=pl.CostEstimate(flops=flops, transcendentals=0,
                                      bytes_accessed=bytes1),
    )(patches, w_mat)
    if spill_y:
        y_bf, sum_rows, ssq_rows = res1
    else:
        y_bf = None
        sum_rows, ssq_rows = res1

    # Fold BN batch statistics (biased variance, as PyTorch with
    # track_running_stats=False) + affine into per-channel (scale, shift).
    # Padded lanes: gamma = beta = 0 -> scale = shift = 0 -> outputs exactly 0.
    # Zero-padded M rows contribute nothing -> divide by the true M.
    # (Single-pass E[y^2]-E[y]^2 with f32 accumulation is fine at 5e-2 tol.)
    ysum = jnp.sum(sum_rows.reshape(n_part, 8, cp)[:, 0, :], axis=0, keepdims=True)
    yssq = jnp.sum(ssq_rows.reshape(n_part, 8, cp)[:, 0, :], axis=0, keepdims=True)
    inv_m = 1.0 / float(m_valid)
    mean = ysum * inv_m
    var = jnp.maximum(yssq * inv_m - mean * mean, 0.0)
    scale = gamma_p * lax.rsqrt(var + EPS)
    shift = beta_p - mean * scale

    # ---- pass 2: apply scale/shift (+residual) (+ReLU) ---------------------
    cs_spec = pl.BlockSpec((1, cp), lambda i: (0, 0))
    out_itemsize = 2 if out_dtype == jnp.bfloat16 else 4
    out_bytes = mp * cp * out_itemsize
    if spill_y:
        in_specs2 = [pl.BlockSpec((tm, cp), lambda i: (i, 0)), cs_spec, cs_spec]
        args2 = [y_bf, scale, shift]
        blk2 = tm * cp * 2 + 2 * cp * 4 + tm * cp * out_itemsize
        bytes2 = mp * cp * 2 + 2 * cp * 4 + out_bytes
        flops2 = 3 * mp * cp
        if residual is not None:
            in_specs2.append(pl.BlockSpec((tm, cp), lambda i: (i, 0)))
            args2.append(residual)
            blk2 += tm * cp * residual.dtype.itemsize
            bytes2 += residual.size * residual.dtype.itemsize
            kernel2 = _bn_apply_residual_relu_kernel
        else:
            kernel2 = functools.partial(_bn_apply_kernel, relu=relu)
    else:
        assert residual is None
        in_specs2 = [pl.BlockSpec((tm, kdim), lambda i: (i, 0)),
                     pl.BlockSpec((kdim, cp), lambda i: (0, 0)),
                     cs_spec, cs_spec]
        args2 = [patches, w_mat, scale, shift]
        blk2 = tm * kdim * 2 + kdim * cp * 2 + 2 * cp * 4 + tm * cp * out_itemsize
        bytes2 = patches.size * 2 + w_mat.size * 2 + 2 * cp * 4 + out_bytes
        flops2 = flops
        kernel2 = functools.partial(_matmul_apply_kernel, relu=relu)

    out = pl.pallas_call(
        kernel2,
        out_shape=jax.ShapeDtypeStruct((mp, cp), out_dtype),
        grid=(num_tiles,),
        in_specs=in_specs2,
        out_specs=pl.BlockSpec((tm, cp), lambda i: (i, 0)),
        compiler_params=pltpu.CompilerParams(
            dimension_semantics=("parallel",),
            vmem_limit_bytes=_vmem_limit(blk2)),
        cost_estimate=pl.CostEstimate(flops=flops2, transcendentals=0,
                                      bytes_accessed=bytes2),
    )(*args2)
    return out


# ---------------------------------------------------------------------------
# Glue: im2col patch extraction + weight preparation (plain JAX)
# ---------------------------------------------------------------------------
def im2col(x_nhwc, kh, kw, stride, pad):
    # TODO(synk): replace with in-kernel halo DMA over NHWC row bands to avoid
    # materializing the kh*kw-expanded patch matrix in HBM.
    n, h, w, c = x_nhwc.shape
    xp = jnp.pad(x_nhwc, ((0, 0), (pad, pad), (pad, pad), (0, 0)))
    ho = (h + 2 * pad - kh) // stride + 1
    wo = (w + 2 * pad - kw) // stride + 1
    cols = []
    for i in range(kh):
        for j in range(kw):
            cols.append(xp[:, i:i + stride * ho:stride, j:j + stride * wo:stride, :])
    patches = jnp.stack(cols, axis=3)                      # (N, Ho, Wo, kh*kw, C)
    return patches.reshape(n * ho * wo, kh * kw * c), ho, wo


def weight_to_mat(w):
    # (Cout, Cin, kh, kw) -> (kh*kw*Cin, Cout), matching im2col flattening order
    cout, cin, kh, kw = w.shape
    return jnp.transpose(w, (2, 3, 1, 0)).reshape(kh * kw * cin, cout)


def prepare_params(params):
    """One-time weight prep: (K, Cp) bf16 weight matrices with the output-channel
    dim zero-padded to the 128-lane width, gamma/beta padded to (1, Cp) f32.

    Correctness invariant (relied on by conv_bn_pallas): padded gamma/beta
    lanes are ZERO, so the folded scale/shift are zero and padded output
    channels are exactly zero.  K is left unpadded (block last dim == full
    array dim is legal; real ResNet32 K values are already 16-aligned)."""
    cout = params["w1"].shape[0]
    cp = _round_up(cout, 128)

    def prep_conv(w, g, b):
        wm = weight_to_mat(w.astype(jnp.float32))           # (K, Cout)
        wm = _pad2d(wm, wm.shape[0], cp).astype(jnp.bfloat16)
        gp = _pad2d(g.reshape(1, -1).astype(jnp.float32), 1, cp)
        bp = _pad2d(b.reshape(1, -1).astype(jnp.float32), 1, cp)
        return wm, gp, bp

    prep = {}
    prep["w1"], prep["g1"], prep["b1"] = prep_conv(params["w1"], params["g1"], params["b1"])
    prep["w2"], prep["g2"], prep["b2"] = prep_conv(params["w2"], params["g2"], params["b2"])
    if "ws" in params:
        prep["sw"], prep["sg"], prep["sb"] = prep_conv(params["ws"], params["gs"], params["bs"])
    return prep


# ---------------------------------------------------------------------------
# ResNetBlock forward (NCHW in / NCHW out, matching the PyTorch module)
# ---------------------------------------------------------------------------
def resnet_block_forward(x_nchw, prep, *, cout):
    x = jnp.transpose(x_nchw, (0, 2, 3, 1))                # NHWC
    n, h, w, cin = x.shape
    cp = prep["w1"].shape[1]
    same = (cin == cout)
    stride = 1 if same else 2
    x_bf = x.astype(jnp.bfloat16)

    # ----- main branch: conv3x3(stride) -> BN -> ReLU (bf16 output) -----
    p1, ho, wo = im2col(x_bf, 3, 3, stride, 1)
    m = n * ho * wo
    tm, mp = _tiles_for(m)
    p1 = _pad_rows(p1, mp)
    h1 = conv_bn_pallas(p1, prep["w1"], prep["g1"], prep["b1"], m, tm,
                        relu=True, spill_y=True, out_dtype=jnp.bfloat16)

    # ----- shortcut branch (bf16 (Mp, Cp) residual; padded channels zero) -----
    if same:
        # identity shortcut: x in bf16, channel-padded to Cp (half the bytes of
        # the previous f32 pad).  TODO(synk): carry at real channel width once
        # in-kernel lane concatenation of the residual is wired up.
        residual = _pad2d(x_bf.reshape(n * h * w, cin), mp, cp)
    else:
        ps, hs, ws = im2col(x_bf, 2, 2, 2, 0)
        ms = n * hs * ws
        assert ms == m                                      # even H/W (module req.)
        ps = _pad_rows(ps, mp)
        residual = conv_bn_pallas(ps, prep["sw"], prep["sg"], prep["sb"], ms, tm,
                                  relu=False, spill_y=False,
                                  out_dtype=jnp.bfloat16)

    # ----- main branch: conv3x3(1) -> BN, fused with +residual and final ReLU -----
    h1_nhwc = h1[:m, :cout].reshape(n, ho, wo, cout)        # drop padded lanes
    p2, _, _ = im2col(h1_nhwc, 3, 3, 1, 1)
    p2 = _pad_rows(p2, mp)
    out = conv_bn_pallas(p2, prep["w2"], prep["g2"], prep["b2"], m, tm,
                         relu=True, residual=residual, spill_y=True,
                         out_dtype=jnp.float32)
    out = out[:m, :cout].reshape(n, ho, wo, cout)
    return jnp.transpose(out, (0, 3, 1, 2))                 # back to NCHW


# ---------------------------------------------------------------------------
# Pure-JAX reference (correctness check)
# ---------------------------------------------------------------------------
def _ref_conv(x, w, stride, pad):
    return lax.conv_general_dilated(
        x, w, (stride, stride), [(pad, pad), (pad, pad)],
        dimension_numbers=("NCHW", "OIHW", "NCHW"))


def _ref_bn(y, g, b):
    mean = jnp.mean(y, axis=(0, 2, 3), keepdims=True)
    var = jnp.mean(jnp.square(y - mean), axis=(0, 2, 3), keepdims=True)
    return (y - mean) * lax.rsqrt(var + EPS) * g.reshape(1, -1, 1, 1) + b.reshape(1, -1, 1, 1)


def ref_forward(x, params):
    cout = params["w1"].shape[0]
    cin = x.shape[1]
    same = cin == cout
    stride = 1 if same else 2
    if same:
        residual = x
    else:
        residual = _ref_bn(_ref_conv(x, params["ws"], 2, 0), params["gs"], params["bs"])
    hh = jnp.maximum(_ref_bn(_ref_conv(x, params["w1"], stride, 1),
                             params["g1"], params["b1"]), 0.0)
    hh = _ref_bn(_ref_conv(hh, params["w2"], 1, 1), params["g2"], params["b2"])
    return jnp.maximum(hh + residual, 0.0)


# ---------------------------------------------------------------------------
# Deterministic parameter init (synthetic; shapes from ResNetBlock.__init__)
# ---------------------------------------------------------------------------
def init_params(key, cin, cout):
    ks = jax.random.split(key, 8)
    params = {
        "w1": 0.1 * jax.random.normal(ks[0], (cout, cin, 3, 3), jnp.float32),
        "g1": 1.0 + 0.1 * jax.random.normal(ks[1], (1, cout), jnp.float32),
        "b1": 0.1 * jax.random.normal(ks[2], (1, cout), jnp.float32),
        "w2": 0.1 * jax.random.normal(ks[3], (cout, cout, 3, 3), jnp.float32),
        "g2": 1.0 + 0.1 * jax.random.normal(ks[4], (1, cout), jnp.float32),
        "b2": 0.1 * jax.random.normal(ks[5], (1, cout), jnp.float32),
    }
    if cin != cout:
        params["ws"] = 0.1 * jax.random.normal(ks[6], (cout, cin, 2, 2), jnp.float32)
        params["gs"] = 1.0 + 0.1 * jax.random.normal(ks[7], (1, cout), jnp.float32)
        params["bs"] = jnp.zeros((1, cout), jnp.float32)
    return params


if __name__ == "__main__":
    key = jax.random.PRNGKey(0)
    kx, kp1, kp2 = jax.random.split(key, 3)
    x = jax.random.normal(kx, (2, 4, 16, 16), jnp.float32)

    fwd = jax.jit(resnet_block_forward, static_argnames=("cout",))

    # Case 1: in_channels != out_channels (downsampling shortcut conv + BN)
    params_ds = init_params(kp1, 4, 8)
    prep_ds = prepare_params(params_ds)              # hoisted weight prep (one-time)
    out_ds = jax.block_until_ready(fwd(x, prep_ds, cout=8))
    assert out_ds.shape == (2, 8, 8, 8), out_ds.shape
    ref_ds = ref_forward(x, params_ds)
    err_ds = float(jnp.max(jnp.abs(out_ds - ref_ds)))
    assert jnp.allclose(out_ds, ref_ds, rtol=5e-2, atol=5e-2), f"downsample mismatch {err_ds}"

    # Case 2: in_channels == out_channels (identity shortcut)
    params_id = init_params(kp2, 4, 4)
    prep_id = prepare_params(params_id)
    out_id = jax.block_until_ready(fwd(x, prep_id, cout=4))
    assert out_id.shape == (2, 4, 16, 16), out_id.shape
    ref_id = ref_forward(x, params_id)
    err_id = float(jnp.max(jnp.abs(out_id - ref_id)))
    assert jnp.allclose(out_id, ref_id, rtol=5e-2, atol=5e-2), f"identity mismatch {err_id}"

    print("KERNEL_OK")
</pallas_src>

<mosaic_0001>
module attributes {stable_mosaic.version = 11 : i64} {
  func.func @_matmul_stats_only_kernel(%arg0: i32, %arg1: i32, %arg2: memref<128x16xbf16, #tpu.memory_space<vmem>>, %arg3: memref<16x128xbf16, #tpu.memory_space<vmem>>, %arg4: memref<8x128xf32, #tpu.memory_space<vmem>>, %arg5: memref<8x128xf32, #tpu.memory_space<vmem>>) attributes {dimension_semantics = [#tpu.dimension_semantics<parallel>, #tpu.dimension_semantics<arbitrary>], iteration_bounds = array<i64: 1, 1>, scalar_prefetch = 0 : i64, scratch_operands = 0 : i64, tpu.core_type = #tpu.core_type<tc>, window_params = [{transform_indices = @transform_0, window_bounds = array<i64: 128, 16>}, {pipeline_mode = #tpu.pipeline_mode<synchronous>, transform_indices = @transform_1, window_bounds = array<i64: 16, 128>}, {transform_indices = @transform_2, window_bounds = array<i64: 8, 128>}, {transform_indices = @transform_3, window_bounds = array<i64: 8, 128>}]} {
    %c0_i32 = arith.constant 0 : i32
    %0 = arith.cmpi eq, %arg1, %c0_i32 : i32
    %1 = arith.extui %0 : i1 to i32
    %c0_i32_0 = arith.constant 0 : i32
    %2 = arith.cmpi ne, %1, %c0_i32_0 : i32
    scf.if %2 {
      %cst_14 = arith.constant 0.000000e+00 : f32
      %19 = vector.broadcast %cst_14 : f32 to vector<8x128xf32>
      %c0_15 = arith.constant 0 : index
      %c0_16 = arith.constant 0 : index
      %20 = vector.load %arg4[%c0_15, %c0_16] : memref<8x128xf32, #tpu.memory_space<vmem>>, vector<8x128xf32>
      tpu.vector_store %arg4[%c0_15, %c0_16], %19 {strides = array<i32>} : memref<8x128xf32, #tpu.memory_space<vmem>>, vector<8x128xf32>,
      %cst_17 = arith.constant 0.000000e+00 : f32
      %21 = vector.broadcast %cst_17 : f32 to vector<8x128xf32>
      %c0_18 = arith.constant 0 : index
      %c0_19 = arith.constant 0 : index
      %22 = vector.load %arg5[%c0_18, %c0_19] : memref<8x128xf32, #tpu.memory_space<vmem>>, vector<8x128xf32>
      tpu.vector_store %arg5[%c0_18, %c0_19], %21 {strides = array<i32>} : memref<8x128xf32, #tpu.memory_space<vmem>>, vector<8x128xf32>,
    } else {
    }
    %c0 = arith.constant 0 : index
    %c0_1 = arith.constant 0 : index
    %3 = vector.load %arg2[%c0, %c0_1] : memref<128x16xbf16, #tpu.memory_space<vmem>>, vector<128x16xbf16>
    %c0_2 = arith.constant 0 : index
    %c0_3 = arith.constant 0 : index
    %4 = vector.load %arg3[%c0_2, %c0_3] : memref<16x128xbf16, #tpu.memory_space<vmem>>, vector<16x128xbf16>
    %cst = arith.constant dense<0.000000e+00> : vector<128x128xf32>
    %5 = tpu.matmul %3, %4, %cst {dimension_numbers = #tpu.dot_dimension_numbers<[1], [0], [0], [1], [0, 0, 1, 1], [], []>} : vector<128x16xbf16>, vector<16x128xbf16>, vector<128x128xf32> -> vector<128x128xf32>
    %c0_4 = arith.constant 0 : index
    %c0_5 = arith.constant 0 : index
    %6 = vector.load %arg4[%c0_4, %c0_5] : memref<8x128xf32, #tpu.memory_space<vmem>>, vector<8x128xf32>
    %cst_6 = arith.constant dense<0.000000e+00> : vector<128xf32>
    %7 = vector.multi_reduction <add>, %5, %cst_6 [0] : vector<128x128xf32> to vector<128xf32>
    %8 = vector.shape_cast %7 : vector<128xf32> to vector<1x128xf32>
    %9 = vector.broadcast %8 : vector<1x128xf32> to vector<8x128xf32>
    %10 = arith.addf %6, %9 : vector<8x128xf32>
    %c0_7 = arith.constant 0 : index
    %c0_8 = arith.constant 0 : index
    %11 = vector.load %arg4[%c0_7, %c0_8] : memref<8x128xf32, #tpu.memory_space<vmem>>, vector<8x128xf32>
    tpu.vector_store %arg4[%c0_7, %c0_8], %10 {strides = array<i32>} : memref<8x128xf32, #tpu.memory_space<vmem>>, vector<8x128xf32>,
    %c0_9 = arith.constant 0 : index
    %c0_10 = arith.constant 0 : index
    %12 = vector.load %arg5[%c0_9, %c0_10] : memref<8x128xf32, #tpu.memory_space<vmem>>, vector<8x128xf32>
    %13 = arith.mulf %5, %5 : vector<128x128xf32>
    %cst_11 = arith.constant dense<0.000000e+00> : vector<128xf32>
    %14 = vector.multi_reduction <add>, %13, %cst_11 [0] : vector<128x128xf32> to vector<128xf32>
    %15 = vector.shape_cast %14 : vector<128xf32> to vector<1x128xf32>
    %16 = vector.broadcast %15 : vector<1x128xf32> to vector<8x128xf32>
    %17 = arith.addf %12, %16 : vector<8x128xf32>
    %c0_12 = arith.constant 0 : index
    %c0_13 = arith.constant 0 : index
    %18 = vector.load %arg5[%c0_12, %c0_13] : memref<8x128xf32, #tpu.memory_space<vmem>>, vector<8x128xf32>
    tpu.vector_store %arg5[%c0_12, %c0_13], %17 {strides = array<i32>} : memref<8x128xf32, #tpu.memory_space<vmem>>, vector<8x128xf32>,
    return
  }
  func.func @transform_0(%arg0: i32, %arg1: i32) -> (i32, i32) {
    %c1_i32 = arith.constant 1 : i32
    %0 = arith.muli %arg0, %c1_i32 : i32
    %1 = arith.addi %0, %arg1 : i32
    %c0_i32 = arith.constant 0 : i32
    %c0_i32_0 = arith.constant 0 : i32
    return %1, %c0_i32 : i32, i32
  }
  func.func @transform_1(%arg0: i32, %arg1: i32) -> (i32, i32) {
    %c0_i32 = arith.constant 0 : i32
    %c0_i32_0 = arith.constant 0 : i32
    %c0_i32_1 = arith.constant 0 : i32
    return %c0_i32, %c0_i32_0 : i32, i32
  }
  func.func @transform_2(%arg0: i32, %arg1: i32) -> (i32, i32) {
    %c0_i32 = arith.constant 0 : i32
    %c0_i32_0 = arith.constant 0 : i32
    return %arg0, %c0_i32 : i32, i32
  }
  func.func @transform_3(%arg0: i32, %arg1: i32) -> (i32, i32) {
    %c0_i32 = arith.constant 0 : i32
    %c0_i32_0 = arith.constant 0 : i32
    return %arg0, %c0_i32 : i32, i32
  }
}

module attributes {stable_mosaic.version = 11 : i64} {
  func.func @_matmul_apply_kernel(%arg0: i32, %arg1: memref<128x16xbf16, #tpu.memory_space<vmem>>, %arg2: memref<16x128xbf16, #tpu.memory_space<vmem>>, %arg3: memref<1x128xf32, #tpu.memory_space<vmem>>, %arg4: memref<1x128xf32, #tpu.memory_space<vmem>>, %arg5: memref<128x128xbf16, #tpu.memory_space<vmem>>) attributes {dimension_semantics = [#tpu.dimension_semantics<parallel>], iteration_bounds = array<i64: 1>, scalar_prefetch = 0 : i64, scratch_operands = 0 : i64, tpu.core_type = #tpu.core_type<tc>, window_params = [{transform_indices = @transform_0, window_bounds = array<i64: 128, 16>}, {pipeline_mode = #tpu.pipeline_mode<synchronous>, transform_indices = @transform_1, window_bounds = array<i64: 16, 128>}, {pipeline_mode = #tpu.pipeline_mode<synchronous>, transform_indices = @transform_2, window_bounds = array<i64: 1, 128>}, {pipeline_mode = #tpu.pipeline_mode<synchronous>, transform_indices = @transform_3, window_bounds = array<i64: 1, 128>}, {transform_indices = @transform_4, window_bounds = array<i64: 128, 128>}]} {
    %c0 = arith.constant 0 : index
    %c0_0 = arith.constant 0 : index
    %0 = vector.load %arg1[%c0, %c0_0] : memref<128x16xbf16, #tpu.memory_space<vmem>>, vector<128x16xbf16>
    %c0_1 = arith.constant 0 : index
    %c0_2 = arith.constant 0 : index
    %1 = vector.load %arg2[%c0_1, %c0_2] : memref<16x128xbf16, #tpu.memory_space<vmem>>, vector<16x128xbf16>
    %cst = arith.constant dense<0.000000e+00> : vector<128x128xf32>
    %2 = tpu.matmul %0, %1, %cst {dimension_numbers = #tpu.dot_dimension_numbers<[1], [0], [0], [1], [0, 0, 1, 1], [], []>} : vector<128x16xbf16>, vector<16x128xbf16>, vector<128x128xf32> -> vector<128x128xf32>
    %c0_3 = arith.constant 0 : index
    %c0_4 = arith.constant 0 : index
    %3 = vector.load %arg3[%c0_3, %c0_4] : memref<1x128xf32, #tpu.memory_space<vmem>>, vector<1x128xf32>
    %4 = vector.broadcast %3 : vector<1x128xf32> to vector<128x128xf32>
    %5 = arith.mulf %2, %4 : vector<128x128xf32>
    %c0_5 = arith.constant 0 : index
    %c0_6 = arith.constant 0 : index
    %6 = vector.load %arg4[%c0_5, %c0_6] : memref<1x128xf32, #tpu.memory_space<vmem>>, vector<1x128xf32>
    %7 = vector.broadcast %6 : vector<1x128xf32> to vector<128x128xf32>
    %8 = arith.addf %5, %7 : vector<128x128xf32>
    %9 = arith.truncf %8 : vector<128x128xf32> to vector<128x128xbf16>
    %c0_7 = arith.constant 0 : index
    %c0_8 = arith.constant 0 : index
    %10 = vector.load %arg5[%c0_7, %c0_8] : memref<128x128xbf16, #tpu.memory_space<vmem>>, vector<128x128xbf16>
    tpu.vector_store %arg5[%c0_7, %c0_8], %9 {strides = array<i32>} : memref<128x128xbf16, #tpu.memory_space<vmem>>, vector<128x128xbf16>,
    return
  }
  func.func @transform_0(%arg0: i32) -> (i32, i32) {
    %c0_i32 = arith.constant 0 : i32
    %c0_i32_0 = arith.constant 0 : i32
    return %arg0, %c0_i32 : i32, i32
  }
  func.func @transform_1(%arg0: i32) -> (i32, i32) {
    %c0_i32 = arith.constant 0 : i32
    %c0_i32_0 = arith.constant 0 : i32
    %c0_i32_1 = arith.constant 0 : i32
    return %c0_i32, %c0_i32_0 : i32, i32
  }
  func.func @transform_2(%arg0: i32) -> (i32, i32) {
    %c0_i32 = arith.constant 0 : i32
    %c0_i32_0 = arith.constant 0 : i32
    %c0_i32_1 = arith.constant 0 : i32
    return %c0_i32, %c0_i32_0 : i32, i32
  }
  func.func @transform_3(%arg0: i32) -> (i32, i32) {
    %c0_i32 = arith.constant 0 : i32
    %c0_i32_0 = arith.constant 0 : i32
    %c0_i32_1 = arith.constant 0 : i32
    return %c0_i32, %c0_i32_0 : i32, i32
  }
  func.func @transform_4(%arg0: i32) -> (i32, i32) {
    %c0_i32 = arith.constant 0 : i32
    %c0_i32_0 = arith.constant 0 : i32
    return %arg0, %c0_i32 : i32, i32
  }
}

module attributes {stable_mosaic.version = 11 : i64} {
  func.func @_matmul_stats_kernel(%arg0: i32, %arg1: i32, %arg2: memref<128x36xbf16, #tpu.memory_space<vmem>>, %arg3: memref<36x128xbf16, #tpu.memory_space<vmem>>, %arg4: memref<128x128xbf16, #tpu.memory_space<vmem>>, %arg5: memref<8x128xf32, #tpu.memory_space<vmem>>, %arg6: memref<8x128xf32, #tpu.memory_space<vmem>>) attributes {dimension_semantics = [#tpu.dimension_semantics<parallel>, #tpu.dimension_semantics<arbitrary>], iteration_bounds = array<i64: 1, 1>, scalar_prefetch = 0 : i64, scratch_operands = 0 : i64, tpu.core_type = #tpu.core_type<tc>, window_params = [{transform_indices = @transform_0, window_bounds = array<i64: 128, 36>}, {pipeline_mode = #tpu.pipeline_mode<synchronous>, transform_indices = @transform_1, window_bounds = array<i64: 36, 128>}, {transform_indices = @transform_2, window_bounds = array<i64: 128, 128>}, {transform_indices = @transform_3, window_bounds = array<i64: 8, 128>}, {transform_indices = @transform_4, window_bounds = array<i64: 8, 128>}]} {
    %c0_i32 = arith.constant 0 : i32
    %0 = arith.cmpi eq, %arg1, %c0_i32 : i32
    %1 = arith.extui %0 : i1 to i32
    %c0_i32_0 = arith.constant 0 : i32
    %2 = arith.cmpi ne, %1, %c0_i32_0 : i32
    scf.if %2 {
      %cst_16 = arith.constant 0.000000e+00 : f32
      %21 = vector.broadcast %cst_16 : f32 to vector<8x128xf32>
      %c0_17 = arith.constant 0 : index
      %c0_18 = arith.constant 0 : index
      %22 = vector.load %arg5[%c0_17, %c0_18] : memref<8x128xf32, #tpu.memory_space<vmem>>, vector<8x128xf32>
      tpu.vector_store %arg5[%c0_17, %c0_18], %21 {strides = array<i32>} : memref<8x128xf32, #tpu.memory_space<vmem>>, vector<8x128xf32>,
      %cst_19 = arith.constant 0.000000e+00 : f32
      %23 = vector.broadcast %cst_19 : f32 to vector<8x128xf32>
      %c0_20 = arith.constant 0 : index
      %c0_21 = arith.constant 0 : index
      %24 = vector.load %arg6[%c0_20, %c0_21] : memref<8x128xf32, #tpu.memory_space<vmem>>, vector<8x128xf32>
      tpu.vector_store %arg6[%c0_20, %c0_21], %23 {strides = array<i32>} : memref<8x128xf32, #tpu.memory_space<vmem>>, vector<8x128xf32>,
    } else {
    }
    %c0 = arith.constant 0 : index
    %c0_1 = arith.constant 0 : index
    %3 = vector.load %arg2[%c0, %c0_1] : memref<128x36xbf16, #tpu.memory_space<vmem>>, vector<128x36xbf16>
    %c0_2 = arith.constant 0 : index
    %c0_3 = arith.constant 0 : index
    %4 = vector.load %arg3[%c0_2, %c0_3] : memref<36x128xbf16, #tpu.memory_space<vmem>>, vector<36x128xbf16>
    %cst = arith.constant dense<0.000000e+00> : vector<128x128xf32>
    %5 = tpu.matmul %3, %4, %cst {dimension_numbers = #tpu.dot_dimension_numbers<[1], [0], [0], [1], [0, 0, 1, 1], [], []>} : vector<128x36xbf16>, vector<36x128xbf16>, vector<128x128xf32> -> vector<128x128xf32>
    %6 = arith.truncf %5 : vector<128x128xf32> to vector<128x128xbf16>
    %c0_4 = arith.constant 0 : index
    %c0_5 = arith.constant 0 : index
    %7 = vector.load %arg4[%c0_4, %c0_5] : memref<128x128xbf16, #tpu.memory_space<vmem>>, vector<128x128xbf16>
    tpu.vector_store %arg4[%c0_4, %c0_5], %6 {strides = array<i32>} : memref<128x128xbf16, #tpu.memory_space<vmem>>, vector<128x128xbf16>,
    %c0_6 = arith.constant 0 : index
    %c0_7 = arith.constant 0 : index
    %8 = vector.load %arg5[%c0_6, %c0_7] : memref<8x128xf32, #tpu.memory_space<vmem>>, vector<8x128xf32>
    %cst_8 = arith.constant dense<0.000000e+00> : vector<128xf32>
    %9 = vector.multi_reduction <add>, %5, %cst_8 [0] : vector<128x128xf32> to vector<128xf32>
    %10 = vector.shape_cast %9 : vector<128xf32> to vector<1x128xf32>
    %11 = vector.broadcast %10 : vector<1x128xf32> to vector<8x128xf32>
    %12 = arith.addf %8, %11 : vector<8x128xf32>
    %c0_9 = arith.constant 0 : index
    %c0_10 = arith.constant 0 : index
    %13 = vector.load %arg5[%c0_9, %c0_10] : memref<8x128xf32, #tpu.memory_space<vmem>>, vector<8x128xf32>
    tpu.vector_store %arg5[%c0_9, %c0_10], %12 {strides = array<i32>} : memref<8x128xf32, #tpu.memory_space<vmem>>, vector<8x128xf32>,
    %c0_11 = arith.constant 0 : index
    %c0_12 = arith.constant 0 : index
    %14 = vector.load %arg6[%c0_11, %c0_12] : memref<8x128xf32, #tpu.memory_space<vmem>>, vector<8x128xf32>
    %15 = arith.mulf %5, %5 : vector<128x128xf32>
    %cst_13 = arith.constant dense<0.000000e+00> : vector<128xf32>
    %16 = vector.multi_reduction <add>, %15, %cst_13 [0] : vector<128x128xf32> to vector<128xf32>
    %17 = vector.shape_cast %16 : vector<128xf32> to vector<1x128xf32>
    %18 = vector.broadcast %17 : vector<1x128xf32> to vector<8x128xf32>
    %19 = arith.addf %14, %18 : vector<8x128xf32>
    %c0_14 = arith.constant 0 : index
    %c0_15 = arith.constant 0 : index
    %20 = vector.load %arg6[%c0_14, %c0_15] : memref<8x128xf32, #tpu.memory_space<vmem>>, vector<8x128xf32>
    tpu.vector_store %arg6[%c0_14, %c0_15], %19 {strides = array<i32>} : memref<8x128xf32, #tpu.memory_space<vmem>>, vector<8x128xf32>,
    return
  }
  func.func @transform_0(%arg0: i32, %arg1: i32) -> (i32, i32) {
    %c1_i32 = arith.constant 1 : i32
    %0 = arith.muli %arg0, %c1_i32 : i32
    %1 = arith.addi %0, %arg1 : i32
    %c0_i32 = arith.constant 0 : i32
    %c0_i32_0 = arith.constant 0 : i32
    return %1, %c0_i32 : i32, i32
  }
  func.func @transform_1(%arg0: i32, %arg1: i32) -> (i32, i32) {
    %c0_i32 = arith.constant 0 : i32
    %c0_i32_0 = arith.constant 0 : i32
    %c0_i32_1 = arith.constant 0 : i32
    return %c0_i32, %c0_i32_0 : i32, i32
  }
  func.func @transform_2(%arg0: i32, %arg1: i32) -> (i32, i32) {
    %c1_i32 = arith.constant 1 : i32
    %0 = arith.muli %arg0, %c1_i32 : i32
    %1 = arith.addi %0, %arg1 : i32
    %c0_i32 = arith.constant 0 : i32
    %c0_i32_0 = arith.constant 0 : i32
    return %1, %c0_i32 : i32, i32
  }
  func.func @transform_3(%arg0: i32, %arg1: i32) -> (i32, i32) {
    %c0_i32 = arith.constant 0 : i32
    %c0_i32_0 = arith.constant 0 : i32
    return %arg0, %c0_i32 : i32, i32
  }
  func.func @transform_4(%arg0: i32, %arg1: i32) -> (i32, i32) {
    %c0_i32 = arith.constant 0 : i32
    %c0_i32_0 = arith.constant 0 : i32
    return %arg0, %c0_i32 : i32, i32
  }
}

module attributes {stable_mosaic.version = 11 : i64} {
  func.func @_bn_apply_kernel(%arg0: i32, %arg1: memref<128x128xbf16, #tpu.memory_space<vmem>>, %arg2: memref<1x128xf32, #tpu.memory_space<vmem>>, %arg3: memref<1x128xf32, #tpu.memory_space<vmem>>, %arg4: memref<128x128xbf16, #tpu.memory_space<vmem>>) attributes {dimension_semantics = [#tpu.dimension_semantics<parallel>], iteration_bounds = array<i64: 1>, scalar_prefetch = 0 : i64, scratch_operands = 0 : i64, tpu.core_type = #tpu.core_type<tc>, window_params = [{transform_indices = @transform_0, window_bounds = array<i64: 128, 128>}, {pipeline_mode = #tpu.pipeline_mode<synchronous>, transform_indices = @transform_1, window_bounds = array<i64: 1, 128>}, {pipeline_mode = #tpu.pipeline_mode<synchronous>, transform_indices = @transform_2, window_bounds = array<i64: 1, 128>}, {transform_indices = @transform_3, window_bounds = array<i64: 128, 128>}]} {
    %c0 = arith.constant 0 : index
    %c0_0 = arith.constant 0 : index
    %0 = vector.load %arg1[%c0, %c0_0] : memref<128x128xbf16, #tpu.memory_space<vmem>>, vector<128x128xbf16>
    %1 = arith.extf %0 : vector<128x128xbf16> to vector<128x128xf32>
    %c0_1 = arith.constant 0 : index
    %c0_2 = arith.constant 0 : index
    %2 = vector.load %arg2[%c0_1, %c0_2] : memref<1x128xf32, #tpu.memory_space<vmem>>, vector<1x128xf32>
    %3 = vector.broadcast %2 : vector<1x128xf32> to vector<128x128xf32>
    %4 = arith.mulf %1, %3 : vector<128x128xf32>
    %c0_3 = arith.constant 0 : index
    %c0_4 = arith.constant 0 : index
    %5 = vector.load %arg3[%c0_3, %c0_4] : memref<1x128xf32, #tpu.memory_space<vmem>>, vector<1x128xf32>
    %6 = vector.broadcast %5 : vector<1x128xf32> to vector<128x128xf32>
    %7 = arith.addf %4, %6 : vector<128x128xf32>
    %cst = arith.constant 0.000000e+00 : f32
    %8 = vector.broadcast %cst : f32 to vector<128x128xf32>
    %9 = arith.maximumf %7, %8 : vector<128x128xf32>
    %10 = arith.truncf %9 : vector<128x128xf32> to vector<128x128xbf16>
    %c0_5 = arith.constant 0 : index
    %c0_6 = arith.constant 0 : index
    %11 = vector.load %arg4[%c0_5, %c0_6] : memref<128x128xbf16, #tpu.memory_space<vmem>>, vector<128x128xbf16>
    tpu.vector_store %arg4[%c0_5, %c0_6], %10 {strides = array<i32>} : memref<128x128xbf16, #tpu.memory_space<vmem>>, vector<128x128xbf16>,
    return
  }
  func.func @transform_0(%arg0: i32) -> (i32, i32) {
    %c0_i32 = arith.constant 0 : i32
    %c0_i32_0 = arith.constant 0 : i32
    return %arg0, %c0_i32 : i32, i32
  }
  func.func @transform_1(%arg0: i32) -> (i32, i32) {
    %c0_i32 = arith.constant 0 : i32
    %c0_i32_0 = arith.constant 0 : i32
    %c0_i32_1 = arith.constant 0 : i32
    return %c0_i32, %c0_i32_0 : i32, i32
  }
  func.func @transform_2(%arg0: i32) -> (i32, i32) {
    %c0_i32 = arith.constant 0 : i32
    %c0_i32_0 = arith.constant 0 : i32
    %c0_i32_1 = arith.constant 0 : i32
    return %c0_i32, %c0_i32_0 : i32, i32
  }
  func.func @transform_3(%arg0: i32) -> (i32, i32) {
    %c0_i32 = arith.constant 0 : i32
    %c0_i32_0 = arith.constant 0 : i32
    return %arg0, %c0_i32 : i32, i32
  }
}

module attributes {stable_mosaic.version = 11 : i64} {
  func.func @_matmul_stats_kernel(%arg0: i32, %arg1: i32, %arg2: memref<128x72xbf16, #tpu.memory_space<vmem>>, %arg3: memref<72x128xbf16, #tpu.memory_space<vmem>>, %arg4: memref<128x128xbf16, #tpu.memory_space<vmem>>, %arg5: memref<8x128xf32, #tpu.memory_space<vmem>>, %arg6: memref<8x128xf32, #tpu.memory_space<vmem>>) attributes {dimension_semantics = [#tpu.dimension_semantics<parallel>, #tpu.dimension_semantics<arbitrary>], iteration_bounds = array<i64: 1, 1>, scalar_prefetch = 0 : i64, scratch_operands = 0 : i64, tpu.core_type = #tpu.core_type<tc>, window_params = [{transform_indices = @transform_0, window_bounds = array<i64: 128, 72>}, {pipeline_mode = #tpu.pipeline_mode<synchronous>, transform_indices = @transform_1, window_bounds = array<i64: 72, 128>}, {transform_indices = @transform_2, window_bounds = array<i64: 128, 128>}, {transform_indices = @transform_3, window_bounds = array<i64: 8, 128>}, {transform_indices = @transform_4, window_bounds = array<i64: 8, 128>}]} {
    %c0_i32 = arith.constant 0 : i32
    %0 = arith.cmpi eq, %arg1, %c0_i32 : i32
    %1 = arith.extui %0 : i1 to i32
    %c0_i32_0 = arith.constant 0 : i32
    %2 = arith.cmpi ne, %1, %c0_i32_0 : i32
    scf.if %2 {
      %cst_16 = arith.constant 0.000000e+00 : f32
      %21 = vector.broadcast %cst_16 : f32 to vector<8x128xf32>
      %c0_17 = arith.constant 0 : index
      %c0_18 = arith.constant 0 : index
      %22 = vector.load %arg5[%c0_17, %c0_18] : memref<8x128xf32, #tpu.memory_space<vmem>>, vector<8x128xf32>
      tpu.vector_store %arg5[%c0_17, %c0_18], %21 {strides = array<i32>} : memref<8x128xf32, #tpu.memory_space<vmem>>, vector<8x128xf32>,
      %cst_19 = arith.constant 0.000000e+00 : f32
      %23 = vector.broadcast %cst_19 : f32 to vector<8x128xf32>
      %c0_20 = arith.constant 0 : index
      %c0_21 = arith.constant 0 : index
      %24 = vector.load %arg6[%c0_20, %c0_21] : memref<8x128xf32, #tpu.memory_space<vmem>>, vector<8x128xf32>
      tpu.vector_store %arg6[%c0_20, %c0_21], %23 {strides = array<i32>} : memref<8x128xf32, #tpu.memory_space<vmem>>, vector<8x128xf32>,
    } else {
    }
    %c0 = arith.constant 0 : index
    %c0_1 = arith.constant 0 : index
    %3 = vector.load %arg2[%c0, %c0_1] : memref<128x72xbf16, #tpu.memory_space<vmem>>, vector<128x72xbf16>
    %c0_2 = arith.constant 0 : index
    %c0_3 = arith.constant 0 : index
    %4 = vector.load %arg3[%c0_2, %c0_3] : memref<72x128xbf16, #tpu.memory_space<vmem>>, vector<72x128xbf16>
    %cst = arith.constant dense<0.000000e+00> : vector<128x128xf32>
    %5 = tpu.matmul %3, %4, %cst {dimension_numbers = #tpu.dot_dimension_numbers<[1], [0], [0], [1], [0, 0, 1, 1], [], []>} : vector<128x72xbf16>, vector<72x128xbf16>, vector<128x128xf32> -> vector<128x128xf32>
    %6 = arith.truncf %5 : vector<128x128xf32> to vector<128x128xbf16>
    %c0_4 = arith.constant 0 : index
    %c0_5 = arith.constant 0 : index
    %7 = vector.load %arg4[%c0_4, %c0_5] : memref<128x128xbf16, #tpu.memory_space<vmem>>, vector<128x128xbf16>
    tpu.vector_store %arg4[%c0_4, %c0_5], %6 {strides = array<i32>} : memref<128x128xbf16, #tpu.memory_space<vmem>>, vector<128x128xbf16>,
    %c0_6 = arith.constant 0 : index
    %c0_7 = arith.constant 0 : index
    %8 = vector.load %arg5[%c0_6, %c0_7] : memref<8x128xf32, #tpu.memory_space<vmem>>, vector<8x128xf32>
    %cst_8 = arith.constant dense<0.000000e+00> : vector<128xf32>
    %9 = vector.multi_reduction <add>, %5, %cst_8 [0] : vector<128x128xf32> to vector<128xf32>
    %10 = vector.shape_cast %9 : vector<128xf32> to vector<1x128xf32>
    %11 = vector.broadcast %10 : vector<1x128xf32> to vector<8x128xf32>
    %12 = arith.addf %8, %11 : vector<8x128xf32>
    %c0_9 = arith.constant 0 : index
    %c0_10 = arith.constant 0 : index
    %13 = vector.load %arg5[%c0_9, %c0_10] : memref<8x128xf32, #tpu.memory_space<vmem>>, vector<8x128xf32>
    tpu.vector_store %arg5[%c0_9, %c0_10], %12 {strides = array<i32>} : memref<8x128xf32, #tpu.memory_space<vmem>>, vector<8x128xf32>,
    %c0_11 = arith.constant 0 : index
    %c0_12 = arith.constant 0 : index
    %14 = vector.load %arg6[%c0_11, %c0_12] : memref<8x128xf32, #tpu.memory_space<vmem>>, vector<8x128xf32>
    %15 = arith.mulf %5, %5 : vector<128x128xf32>
    %cst_13 = arith.constant dense<0.000000e+00> : vector<128xf32>
    %16 = vector.multi_reduction <add>, %15, %cst_13 [0] : vector<128x128xf32> to vector<128xf32>
    %17 = vector.shape_cast %16 : vector<128xf32> to vector<1x128xf32>
    %18 = vector.broadcast %17 : vector<1x128xf32> to vector<8x128xf32>
    %19 = arith.addf %14, %18 : vector<8x128xf32>
    %c0_14 = arith.constant 0 : index
    %c0_15 = arith.constant 0 : index
    %20 = vector.load %arg6[%c0_14, %c0_15] : memref<8x128xf32, #tpu.memory_space<vmem>>, vector<8x128xf32>
    tpu.vector_store %arg6[%c0_14, %c0_15], %19 {strides = array<i32>} : memref<8x128xf32, #tpu.memory_space<vmem>>, vector<8x128xf32>,
    return
  }
  func.func @transform_0(%arg0: i32, %arg1: i32) -> (i32, i32) {
    %c1_i32 = arith.constant 1 : i32
    %0 = arith.muli %arg0, %c1_i32 : i32
    %1 = arith.addi %0, %arg1 : i32
    %c0_i32 = arith.constant 0 : i32
    %c0_i32_0 = arith.constant 0 : i32
    return %1, %c0_i32 : i32, i32
  }
  func.func @transform_1(%arg0: i32, %arg1: i32) -> (i32, i32) {
    %c0_i32 = arith.constant 0 : i32
    %c0_i32_0 = arith.constant 0 : i32
    %c0_i32_1 = arith.constant 0 : i32
    return %c0_i32, %c0_i32_0 : i32, i32
  }
  func.func @transform_2(%arg0: i32, %arg1: i32) -> (i32, i32) {
    %c1_i32 = arith.constant 1 : i32
    %0 = arith.muli %arg0, %c1_i32 : i32
    %1 = arith.addi %0, %arg1 : i32
    %c0_i32 = arith.constant 0 : i32
    %c0_i32_0 = arith.constant 0 : i32
    return %1, %c0_i32 : i32, i32
  }
  func.func @transform_3(%arg0: i32, %arg1: i32) -> (i32, i32) {
    %c0_i32 = arith.constant 0 : i32
    %c0_i32_0 = arith.constant 0 : i32
    return %arg0, %c0_i32 : i32, i32
  }
  func.func @transform_4(%arg0: i32, %arg1: i32) -> (i32, i32) {
    %c0_i32 = arith.constant 0 : i32
    %c0_i32_0 = arith.constant 0 : i32
    return %arg0, %c0_i32 : i32, i32
  }
}

module attributes {stable_mosaic.version = 11 : i64} {
  func.func @_bn_apply_residual_relu_kernel(%arg0: i32, %arg1: memref<128x128xbf16, #tpu.memory_space<vmem>>, %arg2: memref<1x128xf32, #tpu.memory_space<vmem>>, %arg3: memref<1x128xf32, #tpu.memory_space<vmem>>, %arg4: memref<128x128xbf16, #tpu.memory_space<vmem>>, %arg5: memref<128x128xf32, #tpu.memory_space<vmem>>) attributes {dimension_semantics = [#tpu.dimension_semantics<parallel>], iteration_bounds = array<i64: 1>, scalar_prefetch = 0 : i64, scratch_operands = 0 : i64, tpu.core_type = #tpu.core_type<tc>, window_params = [{transform_indices = @transform_0, window_bounds = array<i64: 128, 128>}, {pipeline_mode = #tpu.pipeline_mode<synchronous>, transform_indices = @transform_1, window_bounds = array<i64: 1, 128>}, {pipeline_mode = #tpu.pipeline_mode<synchronous>, transform_indices = @transform_2, window_bounds = array<i64: 1, 128>}, {transform_indices = @transform_3, window_bounds = array<i64: 128, 128>}, {transform_indices = @transform_4, window_bounds = array<i64: 128, 128>}]} {
    %c0 = arith.constant 0 : index
    %c0_0 = arith.constant 0 : index
    %0 = vector.load %arg1[%c0, %c0_0] : memref<128x128xbf16, #tpu.memory_space<vmem>>, vector<128x128xbf16>
    %1 = arith.extf %0 : vector<128x128xbf16> to vector<128x128xf32>
    %c0_1 = arith.constant 0 : index
    %c0_2 = arith.constant 0 : index
    %2 = vector.load %arg2[%c0_1, %c0_2] : memref<1x128xf32, #tpu.memory_space<vmem>>, vector<1x128xf32>
    %3 = vector.broadcast %2 : vector<1x128xf32> to vector<128x128xf32>
    %4 = arith.mulf %1, %3 : vector<128x128xf32>
    %c0_3 = arith.constant 0 : index
    %c0_4 = arith.constant 0 : index
    %5 = vector.load %arg3[%c0_3, %c0_4] : memref<1x128xf32, #tpu.memory_space<vmem>>, vector<1x128xf32>
    %6 = vector.broadcast %5 : vector<1x128xf32> to vector<128x128xf32>
    %7 = arith.addf %4, %6 : vector<128x128xf32>
    %c0_5 = arith.constant 0 : index
    %c0_6 = arith.constant 0 : index
    %8 = vector.load %arg4[%c0_5, %c0_6] : memref<128x128xbf16, #tpu.memory_space<vmem>>, vector<128x128xbf16>
    %9 = arith.extf %8 : vector<128x128xbf16> to vector<128x128xf32>
    %10 = arith.addf %7, %9 : vector<128x128xf32>
    %cst = arith.constant 0.000000e+00 : f32
    %11 = vector.broadcast %cst : f32 to vector<128x128xf32>
    %12 = arith.maximumf %10, %11 : vector<128x128xf32>
    %c0_7 = arith.constant 0 : index
    %c0_8 = arith.constant 0 : index
    %13 = vector.load %arg5[%c0_7, %c0_8] : memref<128x128xf32, #tpu.memory_space<vmem>>, vector<128x128xf32>
    tpu.vector_store %arg5[%c0_7, %c0_8], %12 {strides = array<i32>} : memref<128x128xf32, #tpu.memory_space<vmem>>, vector<128x128xf32>,
    return
  }
  func.func @transform_0(%arg0: i32) -> (i32, i32) {
    %c0_i32 = arith.constant 0 : i32
    %c0_i32_0 = arith.constant 0 : i32
    return %arg0, %c0_i32 : i32, i32
  }
  func.func @transform_1(%arg0: i32) -> (i32, i32) {
    %c0_i32 = arith.constant 0 : i32
    %c0_i32_0 = arith.constant 0 : i32
    %c0_i32_1 = arith.constant 0 : i32
    return %c0_i32, %c0_i32_0 : i32, i32
  }
  func.func @transform_2(%arg0: i32) -> (i32, i32) {
    %c0_i32 = arith.constant 0 : i32
    %c0_i32_0 = arith.constant 0 : i32
    %c0_i32_1 = arith.constant 0 : i32
    return %c0_i32, %c0_i32_0 : i32, i32
  }
  func.func @transform_3(%arg0: i32) -> (i32, i32) {
    %c0_i32 = arith.constant 0 : i32
    %c0_i32_0 = arith.constant 0 : i32
    return %arg0, %c0_i32 : i32, i32
  }
  func.func @transform_4(%arg0: i32) -> (i32, i32) {
    %c0_i32 = arith.constant 0 : i32
    %c0_i32_0 = arith.constant 0 : i32
    return %arg0, %c0_i32 : i32, i32
  }
}

</mosaic_0001>

<bundles_post_ra>
// kernel: resnet_block_forward.8
= control target key start
LH: loop header
LB: loop body
LE: loop exit
PB: predicated region body
PF: predicated region fallthrough
CT: control target
= control target key end

     0   :  { %vm106_vm0 = vcmask 130048   ;;  %s423_s1 = inlined_call_operand.vmem [shape: bf16[16,128], index: 1, kind: input, shape index: {}]   ;;  %s424_s0 = inlined_call_operand.vmem [shape: bf16[128,16], index: 0, kind: input, shape index: {}]   ;;  %s425_s2 = inlined_call_operand.vmem [shape: f32[8,128], index: 2, kind: output, shape index: {0}]   ;;  %s426_s3 = inlined_call_operand.vmem [shape: f32[8,128], index: 3, kind: output, shape index: {1}]  }
   0x1   :  { %v353_v0 = vld [vmem:[%s423_s1] sm:$0xff]   ;;  %v355_v2 = vld [vmem:[%s424_s0 + $0x8] sm:$0xff]   ;;  %v356_v3 = vld [vmem:[%s424_s0 + $0x10] sm:$0xff]  }
   0x2   :  { %v354_v1 = vld [vmem:[%s424_s0] sm:$0xff]   ;;  %332 = vmatprep.subr.bf16.mxu0 %v353_v0  ;;  %350 = vmatprep.subr.bf16.mxu1 %v353_v0  ;;  %v359_v5 = vld [vmem:[%s424_s0 + $0x28] sm:$0xff]   ;;  %v360_v6 = vld [vmem:[%s424_s0 + $0x30] sm:$0xff]  }
   0x3   :  { %333 = vmatpush3.bf16.msra.mxu0 %v353_v0  ;;  %334 = vmatprep.mubr.msk.bf16.mxu0 %vm106_vm0, %v354_v1  ;;  %v358_v4 = vld [vmem:[%s424_s0 + $0x20] sm:$0xff]   ;;  %v357_v7 = vld [vmem:[%s424_s0 + $0x18] sm:$0xff]  }
   0x4   :  { %351 = vmatpush3.bf16.msra.mxu1 %v353_v0  ;;  %342 = vmatprep.mubr.msk.bf16.mxu1 %vm106_vm0, %v358_v4  ;;  %v361_v8 = vld [vmem:[%s424_s0 + $0x38] sm:$0xff]  }
   0x6   :  { %335 = vmatmul.mubr.msk.bf16.vlgmr.msra.gmra.mrb[0].mxu0 %vm106_vm0, %v355_v2 }
   0x7   :  { %338 = vmatprep.mubr.msk.bf16.mxu0 %vm106_vm0, %v356_v3  ;;  %343 = vmatmul.mubr.msk.bf16.vlgmr.msra.gmra.mrb[0].mxu1 %vm106_vm0, %v359_v5 }
   0x8   :  { %346 = vmatprep.mubr.msk.bf16.mxu1 %vm106_vm0, %v360_v6 }
   0xe   :  { %339 = vmatmul.mubr.msk.bf16.gmra.mrb[4].mxu0 %vm106_vm0, %v357_v7 }
   0xf   :  { %347 = vmatmul.mubr.msk.bf16.gmra.mrb[4].mxu1 %vm106_vm0, %v361_v8 }
  0xd9   :  { %v336_v9 = vpop.f32.mrb[0].mxu0 }
  0xda   :  { %v165_v10 = vpop.f32.mrb[1].mxu0  ;;  %v344_v12 = vpop.f32.mrb[0].mxu1  ;;  %v255_v20 = vmul.f32 %v336_v9, %v336_v9 }
  0xdb   :  { %v337_v11 = vpop.f32.mrb[2].mxu0  ;;  %v197_v14 = vpop.f32.mrb[1].mxu1  ;;  %v253_v15 = vmul.f32 %v165_v10, %v165_v10  ;;  %v263_v52 = vmul.f32 %v344_v12, %v344_v12 }
  0xdc   :  { %v168_v13 = vpop.f32.mrb[3].mxu0  ;;  %v345_v18 = vpop.f32.mrb[2].mxu1  ;;  %v256_v23 = vmul.f32 %v337_v11, %v337_v11  ;;  %v261_v46 = vmul.f32 %v197_v14, %v197_v14 }
  0xdd   :  { %v229_v16 = vadd.f32 %v168_v13, %v165_v10  ;;  %v254_v17 = vmul.f32 %v168_v13, %v168_v13  ;;  %v200_v19 = vpop.f32.mrb[3].mxu1  ;;  %v264_v55 = vmul.f32 %v345_v18, %v345_v18 }
  0xde   :  { %v262_v51 = vmul.f32 %v200_v19, %v200_v19 }
  0xdf   :  { %v230_v21 = vadd.f32 %v336_v9, %v229_v16  ;;  %v269_v22 = vadd.f32 %v254_v17, %v253_v15 }
  0xe1   :  { %v270_v24 = vadd.f32 %v269_v22, %v255_v20  ;;  %v340_v25 = vpop.f32.mrb[4].mxu0  ;;  %v231_v26 = vadd.f32 %v337_v11, %v230_v21 }
  0xe2   :  { %v181_v27 = vpop.f32.mrb[5].mxu0  ;;  %v348_v32 = vpop.f32.mrb[4].mxu1  ;;  %v259_v40 = vmul.f32 %v340_v25, %v340_v25 }
  0xe3   :  { %v232_v28 = vadd.f32 %v231_v26, %v181_v27  ;;  %v257_v29 = vmul.f32 %v181_v27, %v181_v27  ;;  %v271_v30 = vadd.f32 %v270_v24, %v256_v23  ;;  %v341_v31 = vpop.f32.mrb[6].mxu0  ;;  %v213_v34 = vpop.f32.mrb[5].mxu1  ;;  %v267_v0 = vmul.f32 %v348_v32, %v348_v32 }
  0xe4   :  { %v184_v33 = vpop.f32.mrb[7].mxu0  ;;  %v349_v38 = vpop.f32.mrb[6].mxu1  ;;  %v260_v43 = vmul.f32 %v341_v31, %v341_v31  ;;  %v265_v58 = vmul.f32 %v213_v34, %v213_v34 }
  0xe5   :  { %v272_v35 = vadd.f32 %v271_v30, %v257_v29  ;;  %v233_v36 = vadd.f32 %v232_v28, %v184_v33  ;;  %v258_v37 = vmul.f32 %v184_v33, %v184_v33  ;;  %v216_v39 = vpop.f32.mrb[7].mxu1  ;;  %v268_v3 = vmul.f32 %v349_v38, %v349_v38 }
  0xe6   :  { %v266_v63 = vmul.f32 %v216_v39, %v216_v39 }
  0xe7   :  { %v234_v41 = vadd.f32 %v340_v25, %v233_v36  ;;  %v273_v42 = vadd.f32 %v272_v35, %v258_v37 }
  0xe9   :  { %v274_v44 = vadd.f32 %v273_v42, %v259_v40  ;;  %v235_v45 = vadd.f32 %v341_v31, %v234_v41 }
  0xeb   :  { %v236_v47 = vadd.f32 %v235_v45, %v197_v14  ;;  %v275_v48 = vadd.f32 %v274_v44, %v260_v43 }
  0xed   :  { %v276_v49 = vadd.f32 %v275_v48, %v261_v46  ;;  %v237_v50 = vadd.f32 %v236_v47, %v200_v19 }
  0xef   :  { %v238_v53 = vadd.f32 %v344_v12, %v237_v50  ;;  %v277_v54 = vadd.f32 %v276_v49, %v262_v51 }
  0xf1   :  { %v278_v56 = vadd.f32 %v277_v54, %v263_v52  ;;  %v239_v57 = vadd.f32 %v345_v18, %v238_v53 }
  0xf3   :  { %v240_v59 = vadd.f32 %v239_v57, %v213_v34  ;;  %v279_v60 = vadd.f32 %v278_v56, %v264_v55 }
  0xf5   :  { %v280_v61 = vadd.f32 %v279_v60, %v265_v58  ;;  %v241_v62 = vadd.f32 %v240_v59, %v216_v39 }
  0xf7   :  { %v242_v1 = vadd.f32 %v348_v32, %v241_v62  ;;  %v281_v2 = vadd.f32 %v280_v61, %v266_v63 }
  0xf9   :  { %v243_v4 = vadd.f32 %v349_v38, %v242_v1  ;;  %v282_v5 = vadd.f32 %v281_v2, %v267_v0 }
  0xfb   :  { %v244_v6 = vrot.slane %v243_v4, 4  ;;  %v283_v7 = vadd.f32 %v282_v5, %v268_v3 }
  0xfd   :  { %v245_v8 = vadd.f32 %v244_v6, %v243_v4  ;;  %v284_v9 = vrot.slane %v283_v7, 4 }
  0xff   :  { %v246_v10 = vrot.slane %v245_v8, 2  ;;  %v285_v11 = vadd.f32 %v284_v9, %v283_v7 }
 0x101   :  { %v247_v12 = vadd.f32 %v246_v10, %v245_v8  ;;  %v286_v13 = vrot.slane %v285_v11, 2 }
 0x103   :  { %v248_v14 = vrot.slane %v247_v12, 1  ;;  %v287_v15 = vadd.f32 %v286_v13, %v285_v11 }
 0x105   :  { %v249_v16 = vadd.f32 %v248_v14, %v247_v12  ;;  %v288_v17 = vrot.slane %v287_v15, 1 }
 0x107   :  { %v289_v18 = vadd.f32 %v288_v17, %v287_v15  ;;  %251 = vst [vmem:[%s425_s2] sm:$0xff] %v249_v16 }
 0x109   :  { %291 = vst [vmem:[%s426_s3] sm:$0xff] %v289_v18 }

// kernel: resnet_block_forward.9
= control target key start
LH: loop header
LB: loop body
LE: loop exit
PB: predicated region body
PF: predicated region fallthrough
CT: control target
= control target key end

     0   :  { %vm82_vm0 = vcmask 130048   ;;  %s560_s1 = inlined_call_operand.vmem [shape: bf16[16,128], index: 1, kind: input, shape index: {}]   ;;  %s561_s0 = inlined_call_operand.vmem [shape: bf16[128,16], index: 0, kind: input, shape index: {}]   ;;  %s562_s2 = inlined_call_operand.vmem [shape: f32[1,128], index: 2, kind: input, shape index: {}]   ;;  %s563_s3 = inlined_call_operand.vmem [shape: f32[1,128], index: 3, kind: input, shape index: {}]   ;;  %s564_s4 = inlined_call_operand.vmem [shape: bf16[128,128], index: 4, kind: output, shape index: {}]  }
   0x1   :  { %v461_v0 = vld [vmem:[%s560_s1] sm:$0xff]   ;;  %v464_v3 = vld [vmem:[%s561_s0 + $0x8] sm:$0xff]   ;;  %v466_v5 = vld [vmem:[%s561_s0 + $0x10] sm:$0xff]  }
   0x2   :  { %v462_v1 = vld [vmem:[%s561_s0] sm:$0xff]   ;;  %441 = vmatprep.subr.bf16.mxu0 %v461_v0  ;;  %459 = vmatprep.subr.bf16.mxu1 %v461_v0  ;;  %v465_v4 = vld [vmem:[%s561_s0 + $0x28] sm:$0xff]   ;;  %v467_v6 = vld [vmem:[%s561_s0 + $0x30] sm:$0xff]  }
   0x3   :  { %v463_v2 = vld [vmem:[%s561_s0 + $0x20] sm:$0xff]   ;;  %442 = vmatpush3.bf16.msra.mxu0 %v461_v0  ;;  %460 = vmatpush3.bf16.msra.mxu1 %v461_v0  ;;  %v468_v7 = vld [vmem:[%s561_s0 + $0x18] sm:$0xff]  }
   0x4   :  { %443 = vmatprep.mubr.msk.bf16.mxu0 %vm82_vm0, %v462_v1  ;;  %451 = vmatprep.mubr.msk.bf16.mxu1 %vm82_vm0, %v463_v2  ;;  %v469_v8 = vld [vmem:[%s561_s0 + $0x38] sm:$0xff]   ;;  %v351_v9 = vld [vmem:[%s562_s2] ss:$0 sm:$0xff] }
   0x5   :  { %v352_v16 = vld [vmem:[%s563_s3] ss:$0 sm:$0xff] }
   0x6   :  { %444 = vmatmul.mubr.msk.bf16.vlgmr.msra.gmra.mrb[0].mxu0 %vm82_vm0, %v464_v3  ;;  %452 = vmatmul.mubr.msk.bf16.vlgmr.msra.gmra.mrb[0].mxu1 %vm82_vm0, %v465_v4 }
   0x7   :  { %447 = vmatprep.mubr.msk.bf16.mxu0 %vm82_vm0, %v466_v5  ;;  %455 = vmatprep.mubr.msk.bf16.mxu1 %vm82_vm0, %v467_v6 }
   0xe   :  { %448 = vmatmul.mubr.msk.bf16.gmra.mrb[4].mxu0 %vm82_vm0, %v468_v7  ;;  %456 = vmatmul.mubr.msk.bf16.gmra.mrb[4].mxu1 %vm82_vm0, %v469_v8 }
  0xd9   :  { %v445_v10 = vpop.f32.mrb[0].mxu0  ;;  %v453_v11 = vpop.f32.mrb[0].mxu1 }
  0xda   :  { %v213_v12 = vmul.f32 %v445_v10, %v351_v9  ;;  %v221_v13 = vmul.f32 %v453_v11, %v351_v9  ;;  %v141_v14 = vpop.f32.mrb[1].mxu0  ;;  %v173_v15 = vpop.f32.mrb[1].mxu1 }
  0xdb   :  { %v211_v17 = vmul.f32 %v351_v9, %v141_v14  ;;  %v219_v18 = vmul.f32 %v351_v9, %v173_v15  ;;  %v446_v19 = vpop.f32.mrb[2].mxu0  ;;  %v454_v20 = vpop.f32.mrb[2].mxu1 }
  0xdc   :  { %v214_v21 = vmul.f32 %v446_v19, %v351_v9  ;;  %v222_v22 = vmul.f32 %v454_v20, %v351_v9  ;;  %v144_v23 = vpop.f32.mrb[3].mxu0  ;;  %v176_v24 = vpop.f32.mrb[3].mxu1  ;;  %v236_v27 = vadd.f32 %v352_v16, %v213_v12  ;;  %v244_v28 = vadd.f32 %v352_v16, %v221_v13 }
  0xdd   :  { %v212_v25 = vmul.f32 %v351_v9, %v144_v23  ;;  %v220_v26 = vmul.f32 %v351_v9, %v176_v24  ;;  %v234_v31 = vadd.f32 %v352_v16, %v211_v17  ;;  %v242_v32 = vadd.f32 %v352_v16, %v219_v18 }
  0xde   :  { %v237_v29 = vadd.f32 %v352_v16, %v214_v21  ;;  %v245_v30 = vadd.f32 %v352_v16, %v222_v22 }
  0xdf   :  { %v235_v33 = vadd.f32 %v352_v16, %v212_v25  ;;  %v243_v34 = vadd.f32 %v352_v16, %v220_v26 }
  0xe0   :  { %v393_v35 = vpack.c.bf16 %v237_v29, %v236_v27  ;;  %v413_v36 = vpack.c.bf16 %v245_v30, %v244_v28 }
  0xe1   :  { %v388_v37 = vpack.c.bf16 %v235_v33, %v234_v31  ;;  %v408_v38 = vpack.c.bf16 %v243_v34, %v242_v32  ;;  %v449_v39 = vpop.f32.mrb[4].mxu0  ;;  %v457_v40 = vpop.f32.mrb[4].mxu1 }
  0xe2   :  { %425 = vst [vmem:[%s564_s4 + $0x8] sm:$0xff] %v393_v35   ;;  %429 = vst [vmem:[%s564_s4 + $0x28] sm:$0xff] %v413_v36   ;;  %v217_v41 = vmul.f32 %v449_v39, %v351_v9  ;;  %v225_v42 = vmul.f32 %v457_v40, %v351_v9  ;;  %v157_v43 = vpop.f32.mrb[5].mxu0  ;;  %v189_v44 = vpop.f32.mrb[5].mxu1 }
  0xe3   :  { %389 = vst [vmem:[%s564_s4] sm:$0xff] %v388_v37   ;;  %428 = vst [vmem:[%s564_s4 + $0x20] sm:$0xff] %v408_v38   ;;  %v215_v45 = vmul.f32 %v351_v9, %v157_v43  ;;  %v223_v46 = vmul.f32 %v351_v9, %v189_v44  ;;  %v450_v47 = vpop.f32.mrb[6].mxu0  ;;  %v458_v48 = vpop.f32.mrb[6].mxu1 }
  0xe4   :  { %v218_v49 = vmul.f32 %v450_v47, %v351_v9  ;;  %v226_v50 = vmul.f32 %v458_v48, %v351_v9  ;;  %v160_v51 = vpop.f32.mrb[7].mxu0  ;;  %v192_v52 = vpop.f32.mrb[7].mxu1  ;;  %v240_v55 = vadd.f32 %v352_v16, %v217_v41  ;;  %v248_v56 = vadd.f32 %v352_v16, %v225_v42 }
  0xe5   :  { %v216_v53 = vmul.f32 %v351_v9, %v160_v51  ;;  %v224_v54 = vmul.f32 %v351_v9, %v192_v52  ;;  %v238_v59 = vadd.f32 %v352_v16, %v215_v45  ;;  %v246_v60 = vadd.f32 %v352_v16, %v223_v46 }
  0xe6   :  { %v241_v57 = vadd.f32 %v352_v16, %v218_v49  ;;  %v249_v58 = vadd.f32 %v352_v16, %v226_v50 }
  0xe7   :  { %v239_v61 = vadd.f32 %v352_v16, %v216_v53  ;;  %v247_v62 = vadd.f32 %v352_v16, %v224_v54 }
  0xe8   :  { %v403_v63 = vpack.c.bf16 %v241_v57, %v240_v55  ;;  %v423_v0 = vpack.c.bf16 %v249_v58, %v248_v56 }
  0xe9   :  { %v398_v1 = vpack.c.bf16 %v239_v61, %v238_v59  ;;  %v418_v2 = vpack.c.bf16 %v247_v62, %v246_v60 }
  0xea   :  { %427 = vst [vmem:[%s564_s4 + $0x18] sm:$0xff] %v403_v63   ;;  %431 = vst [vmem:[%s564_s4 + $0x38] sm:$0xff] %v423_v0  }
  0xeb   :  { %426 = vst [vmem:[%s564_s4 + $0x10] sm:$0xff] %v398_v1   ;;  %430 = vst [vmem:[%s564_s4 + $0x30] sm:$0xff] %v418_v2  }

// kernel: resnet_block_forward.6
= control target key start
LH: loop header
LB: loop body
LE: loop exit
PB: predicated region body
PF: predicated region fallthrough
CT: control target
= control target key end

     0   :  { %vm133_vm0 = vcmask 293888   ;;  %vm158_vm1 = vcmask 1041408   ;;  %s690_s1 = inlined_call_operand.vmem [shape: bf16[36,128], index: 1, kind: input, shape index: {}]   ;;  %s691_s0 = inlined_call_operand.vmem [shape: bf16[128,36], index: 0, kind: input, shape index: {}]   ;;  %s692_s2 = inlined_call_operand.vmem [shape: bf16[128,128], index: 2, kind: output, shape index: {0}]   ;;  %s693_s3 = inlined_call_operand.vmem [shape: f32[8,128], index: 3, kind: output, shape index: {1}]   ;;  %s694_s4 = inlined_call_operand.vmem [shape: f32[8,128], index: 4, kind: output, shape index: {2}]  }
   0x1   :  { %v583_v0 = vld [vmem:[%s690_s1] sm:$0xff]   ;;  %v584_v1 = vld [vmem:[%s690_s1 + $0x8] sm:$0xff]   ;;  %v585_v2 = vld [vmem:[%s690_s1 + $0x10] ss:$0 sps:$4 sm:$0x33]  }
   0x2   :  { %552 = vmatprep.subr.bf16.mxu0 %v583_v0  ;;  %v586_v3 = vld [vmem:[%s691_s0] sm:$0xff]   ;;  %574 = vmatprep.subr.bf16.mxu1 %v583_v0  ;;  %v160_v5 = vsel %vm158_vm1, %v585_v2, 0  ;;  %v587_v6 = vld [vmem:[%s691_s0 + $0x8] sm:$0xff]   ;;  %v588_v8 = vld [vmem:[%s691_s0 + $0x10] sm:$0xff]  }
   0x3   :  { %553 = vmatpush3.bf16.msra.mxu0 %v583_v0  ;;  %577 = vmatpush3.bf16.msra.mxu1 %v583_v0  ;;  %v590_v4 = vld [vmem:[%s691_s0 + $0x20] sm:$0xff]   ;;  %v591_v7 = vld [vmem:[%s691_s0 + $0x28] sm:$0xff]   ;;  %v592_v9 = vld [vmem:[%s691_s0 + $0x30] sm:$0xff]  }
   0x4   :  { %554 = vmatprep.subr.bf16.mxu0 %v584_v1  ;;  %558 = vmatprep.mubr.msk.bf16.mxu0 %vm133_vm0, %v586_v3  ;;  %v589_v10 = vld [vmem:[%s691_s0 + $0x18] sm:$0xff]  }
   0x5   :  { %575 = vmatprep.subr.bf16.mxu1 %v584_v1  ;;  %566 = vmatprep.mubr.msk.bf16.mxu1 %vm133_vm0, %v590_v4  ;;  %v593_v11 = vld [vmem:[%s691_s0 + $0x38] sm:$0xff]  }
   0x7   :  { %555 = vmatpush3.bf16.msra.mxu0 %v584_v1  ;;  %578 = vmatpush3.bf16.msra.mxu1 %v584_v1 }
   0x8   :  { %580 = vmatprep.subr.msk.bf16.mxu0 %vm158_vm1, %v585_v2  ;;  %581 = vmatprep.subr.msk.bf16.mxu1 %vm158_vm1, %v585_v2 }
   0xb   :  { %557 = vmatpush3.bf16.msra.mxu0 %v160_v5  ;;  %579 = vmatpush3.bf16.msra.mxu1 %v160_v5 }
   0xe   :  { %559 = vmatmul.mubr.msk.bf16.vlgmr.msra.gmra.mrb[0].mxu0 %vm133_vm0, %v587_v6  ;;  %567 = vmatmul.mubr.msk.bf16.vlgmr.msra.gmra.mrb[0].mxu1 %vm133_vm0, %v591_v7 }
   0xf   :  { %562 = vmatprep.mubr.msk.bf16.mxu0 %vm133_vm0, %v588_v8  ;;  %570 = vmatprep.mubr.msk.bf16.mxu1 %vm133_vm0, %v592_v9 }
  0x16   :  { %563 = vmatmul.mubr.msk.bf16.gmra.mrb[4].mxu0 %vm133_vm0, %v589_v10  ;;  %571 = vmatmul.mubr.msk.bf16.gmra.mrb[4].mxu1 %vm133_vm0, %v593_v11 }
  0xe1   :  { %v560_v12 = vpop.f32.mrb[0].mxu0  ;;  %v568_v13 = vpop.f32.mrb[0].mxu1 }
  0xe2   :  { %v196_v14 = vpop.f32.mrb[1].mxu0  ;;  %v228_v15 = vpop.f32.mrb[1].mxu1  ;;  %v366_v27 = vmul.f32 %v560_v12, %v560_v12  ;;  %v374_v63 = vmul.f32 %v568_v13, %v568_v13 }
  0xe3   :  { %v561_v16 = vpop.f32.mrb[2].mxu0  ;;  %v569_v17 = vpop.f32.mrb[2].mxu1  ;;  %v364_v18 = vmul.f32 %v196_v14, %v196_v14  ;;  %v372_v57 = vmul.f32 %v228_v15, %v228_v15 }
  0xe4   :  { %v502_v19 = vpack.c.bf16 %v561_v16, %v560_v12  ;;  %v199_v20 = vpop.f32.mrb[3].mxu0  ;;  %v522_v21 = vpack.c.bf16 %v569_v17, %v568_v13  ;;  %v231_v22 = vpop.f32.mrb[3].mxu1  ;;  %v367_v30 = vmul.f32 %v561_v16, %v561_v16  ;;  %v375_v2 = vmul.f32 %v569_v17, %v569_v17 }
  0xe5   :  { %v497_v23 = vpack.c.bf16 %v199_v20, %v196_v14  ;;  %v340_v24 = vadd.f32 %v199_v20, %v196_v14  ;;  %v365_v25 = vmul.f32 %v199_v20, %v199_v20  ;;  %v517_v26 = vpack.c.bf16 %v231_v22, %v228_v15 }
  0xe6   :  { %534 = vst [vmem:[%s692_s2 + $0x8] sm:$0xff] %v502_v19   ;;  %538 = vst [vmem:[%s692_s2 + $0x28] sm:$0xff] %v522_v21   ;;  %v373_v62 = vmul.f32 %v231_v22, %v231_v22 }
  0xe7   :  { %498 = vst [vmem:[%s692_s2] sm:$0xff] %v497_v23   ;;  %v341_v28 = vadd.f32 %v560_v12, %v340_v24  ;;  %v380_v29 = vadd.f32 %v365_v25, %v364_v18  ;;  %537 = vst [vmem:[%s692_s2 + $0x20] sm:$0xff] %v517_v26  }
  0xe9   :  { %v381_v31 = vadd.f32 %v380_v29, %v366_v27  ;;  %v564_v32 = vpop.f32.mrb[4].mxu0  ;;  %v342_v33 = vadd.f32 %v561_v16, %v341_v28  ;;  %v572_v34 = vpop.f32.mrb[4].mxu1 }
  0xea   :  { %v212_v35 = vpop.f32.mrb[5].mxu0  ;;  %v244_v36 = vpop.f32.mrb[5].mxu1  ;;  %v370_v51 = vmul.f32 %v564_v32, %v564_v32  ;;  %v378_v11 = vmul.f32 %v572_v34, %v572_v34 }
  0xeb   :  { %v343_v37 = vadd.f32 %v342_v33, %v212_v35  ;;  %v368_v38 = vmul.f32 %v212_v35, %v212_v35  ;;  %v382_v39 = vadd.f32 %v381_v31, %v367_v30  ;;  %v565_v40 = vpop.f32.mrb[6].mxu0  ;;  %v573_v41 = vpop.f32.mrb[6].mxu1  ;;  %v376_v5 = vmul.f32 %v244_v36, %v244_v36 }
  0xec   :  { %v512_v42 = vpack.c.bf16 %v565_v40, %v564_v32  ;;  %v215_v43 = vpop.f32.mrb[7].mxu0  ;;  %v532_v44 = vpack.c.bf16 %v573_v41, %v572_v34  ;;  %v247_v45 = vpop.f32.mrb[7].mxu1  ;;  %v371_v54 = vmul.f32 %v565_v40, %v565_v40 }
  0xed   :  { %v383_v46 = vadd.f32 %v382_v39, %v368_v38  ;;  %v507_v47 = vpack.c.bf16 %v215_v43, %v212_v35  ;;  %v344_v48 = vadd.f32 %v343_v37, %v215_v43  ;;  %v369_v49 = vmul.f32 %v215_v43, %v215_v43 }
  0xee   :  { %536 = vst [vmem:[%s692_s2 + $0x18] sm:$0xff] %v512_v42   ;;  %540 = vst [vmem:[%s692_s2 + $0x38] sm:$0xff] %v532_v44   ;;  %v527_v50 = vpack.c.bf16 %v247_v45, %v244_v36  ;;  %v377_v10 = vmul.f32 %v247_v45, %v247_v45 }
  0xef   :  { %535 = vst [vmem:[%s692_s2 + $0x10] sm:$0xff] %v507_v47   ;;  %v345_v52 = vadd.f32 %v564_v32, %v344_v48  ;;  %v384_v53 = vadd.f32 %v383_v46, %v369_v49 }
  0xf0   :  { %539 = vst [vmem:[%s692_s2 + $0x30] sm:$0xff] %v527_v50  }
  0xf1   :  { %v385_v55 = vadd.f32 %v384_v53, %v370_v51  ;;  %v346_v56 = vadd.f32 %v565_v40, %v345_v52 }
  0xf3   :  { %v347_v58 = vadd.f32 %v346_v56, %v228_v15  ;;  %v386_v59 = vadd.f32 %v385_v55, %v371_v54  ;;  %v379_v15 = vmul.f32 %v573_v41, %v573_v41 }
  0xf5   :  { %v387_v60 = vadd.f32 %v386_v59, %v372_v57  ;;  %v348_v61 = vadd.f32 %v347_v58, %v231_v22 }
  0xf7   :  { %v349_v0 = vadd.f32 %v568_v13, %v348_v61  ;;  %v388_v1 = vadd.f32 %v387_v60, %v373_v62 }
  0xf9   :  { %v389_v3 = vadd.f32 %v388_v1, %v374_v63  ;;  %v350_v4 = vadd.f32 %v569_v17, %v349_v0 }
  0xfb   :  { %v351_v6 = vadd.f32 %v350_v4, %v244_v36  ;;  %v390_v7 = vadd.f32 %v389_v3, %v375_v2 }
  0xfd   :  { %v391_v8 = vadd.f32 %v390_v7, %v376_v5  ;;  %v352_v9 = vadd.f32 %v351_v6, %v247_v45 }
  0xff   :  { %v353_v12 = vadd.f32 %v572_v34, %v352_v9  ;;  %v392_v14 = vadd.f32 %v391_v8, %v377_v10 }
 0x101   :  { %v354_v16 = vadd.f32 %v573_v41, %v353_v12  ;;  %v393_v18 = vadd.f32 %v392_v14, %v378_v11 }
 0x103   :  { %v355_v19 = vrot.slane %v354_v16, 4  ;;  %v394_v20 = vadd.f32 %v393_v18, %v379_v15 }
 0x105   :  { %v356_v21 = vadd.f32 %v355_v19, %v354_v16  ;;  %v395_v13 = vrot.slane %v394_v20, 4 }
 0x107   :  { %v357_v22 = vrot.slane %v356_v21, 2  ;;  %v396_v23 = vadd.f32 %v395_v13, %v394_v20 }
 0x109   :  { %v358_v24 = vadd.f32 %v357_v22, %v356_v21  ;;  %v397_v17 = vrot.slane %v396_v23, 2 }
 0x10b   :  { %v359_v25 = vrot.slane %v358_v24, 1  ;;  %v398_v26 = vadd.f32 %v397_v17, %v396_v23 }
 0x10d   :  { %v360_v27 = vadd.f32 %v359_v25, %v358_v24  ;;  %v399_v28 = vrot.slane %v398_v26, 1 }
 0x10f   :  { %v400_v29 = vadd.f32 %v399_v28, %v398_v26  ;;  %362 = vst [vmem:[%s693_s3] sm:$0xff] %v360_v27 }
 0x111   :  { %402 = vst [vmem:[%s694_s4] sm:$0xff] %v400_v29 }

// kernel: resnet_block_forward.7
= control target key start
LH: loop header
LB: loop body
LE: loop exit
PB: predicated region body
PF: predicated region fallthrough
CT: control target
= control target key end

     0   :  { %s422_s0 = inlined_call_operand.vmem [shape: bf16[128,128], index: 0, kind: input, shape index: {}]   ;;  %s423_s1 = inlined_call_operand.vmem [shape: f32[1,128], index: 1, kind: input, shape index: {}]   ;;  %s424_s2 = inlined_call_operand.vmem [shape: f32[1,128], index: 2, kind: input, shape index: {}]   ;;  %s425_s3 = inlined_call_operand.vmem [shape: bf16[128,128], index: 3, kind: output, shape index: {}]  }
   0x1   :  { %v227_v0 = vld [vmem:[%s422_s0] sm:$0xff]   ;;  %v298_v4 = vld [vmem:[%s422_s0 + $0x8] sm:$0xff]   ;;  %v299_v5 = vld [vmem:[%s422_s0 + $0x10] sm:$0xff]  }
   0x2   :  { %v338_v1 = vld [vmem:[%s423_s1] ss:$0 sm:$0xff]  ;;  %v228_v2 = vunpack.c.l.bf16 %v227_v0  ;;  %v229_v3 = vunpack.c.h.bf16 %v227_v0  ;;  %v300_v6 = vld [vmem:[%s422_s0 + $0x18] sm:$0xff]   ;;  %v232_v8 = vunpack.c.l.bf16 %v298_v4  ;;  %v233_v9 = vunpack.c.h.bf16 %v298_v4  ;;  %v302_v33 = vld [vmem:[%s422_s0 + $0x28] sm:$0xff]  }
   0x3   :  { %v352_v7 = vld [vmem:[%s424_s2] ss:$0 sm:$0xff]  ;;  %v236_v10 = vunpack.c.l.bf16 %v299_v5  ;;  %v237_v11 = vunpack.c.h.bf16 %v299_v5  ;;  %v240_v14 = vunpack.c.l.bf16 %v300_v6  ;;  %v241_v15 = vunpack.c.h.bf16 %v300_v6  ;;  %v303_v38 = vld [vmem:[%s422_s0 + $0x30] sm:$0xff]   ;;  %v304_v43 = vld [vmem:[%s422_s0 + $0x38] sm:$0xff]  }
   0x4   :  { %v53_v12 = vmul.f32 %v228_v2, %v338_v1  ;;  %v54_v13 = vmul.f32 %v229_v3, %v338_v1  ;;  %v55_v16 = vmul.f32 %v232_v8, %v338_v1  ;;  %v56_v17 = vmul.f32 %v233_v9, %v338_v1  ;;  %v301_v28 = vld [vmem:[%s422_s0 + $0x20] sm:$0xff]  }
   0x5   :  { %v57_v18 = vmul.f32 %v236_v10, %v338_v1  ;;  %v58_v19 = vmul.f32 %v237_v11, %v338_v1  ;;  %v59_v22 = vmul.f32 %v240_v14, %v338_v1  ;;  %v60_v23 = vmul.f32 %v241_v15, %v338_v1 }
   0x6   :  { %v76_v20 = vadd.f32 %v352_v7, %v53_v12  ;;  %v77_v21 = vadd.f32 %v352_v7, %v54_v13  ;;  %v78_v24 = vadd.f32 %v352_v7, %v55_v16  ;;  %v79_v25 = vadd.f32 %v352_v7, %v56_v17 }
   0x7   :  { %v80_v26 = vadd.f32 %v352_v7, %v57_v18  ;;  %v81_v27 = vadd.f32 %v352_v7, %v58_v19  ;;  %v82_v31 = vadd.f32 %v352_v7, %v59_v22  ;;  %v83_v32 = vadd.f32 %v352_v7, %v60_v23 }
   0x8   :  { %v92_v29 = vmax.f32 %v76_v20, 0.0  ;;  %v93_v30 = vmax.f32 %v77_v21, 0.0  ;;  %v94_v34 = vmax.f32 %v78_v24, 0.0  ;;  %v95_v35 = vmax.f32 %v79_v25, 0.0 }
   0x9   :  { %v96_v36 = vmax.f32 %v80_v26, 0.0  ;;  %v97_v37 = vmax.f32 %v81_v27, 0.0  ;;  %v98_v40 = vmax.f32 %v82_v31, 0.0  ;;  %v99_v41 = vmax.f32 %v83_v32, 0.0 }
   0xa   :  { %v261_v39 = vpack.c.bf16 %v93_v30, %v92_v29  ;;  %v244_v42 = vunpack.c.l.bf16 %v301_v28  ;;  %v266_v44 = vpack.c.bf16 %v95_v35, %v94_v34  ;;  %v245_v46 = vunpack.c.h.bf16 %v301_v28 }
   0xb   :  { %v271_v45 = vpack.c.bf16 %v97_v37, %v96_v36  ;;  %v248_v47 = vunpack.c.l.bf16 %v302_v33  ;;  %v276_v48 = vpack.c.bf16 %v99_v41, %v98_v40  ;;  %v249_v50 = vunpack.c.h.bf16 %v302_v33 }
   0xc   :  { %262 = vst [vmem:[%s425_s3] sm:$0xff] %v261_v39   ;;  %v61_v49 = vmul.f32 %v244_v42, %v338_v1  ;;  %v252_v51 = vunpack.c.l.bf16 %v303_v38  ;;  %305 = vst [vmem:[%s425_s3 + $0x8] sm:$0xff] %v266_v44   ;;  %v62_v52 = vmul.f32 %v245_v46, %v338_v1  ;;  %v253_v54 = vunpack.c.h.bf16 %v303_v38 }
   0xd   :  { %306 = vst [vmem:[%s425_s3 + $0x10] sm:$0xff] %v271_v45   ;;  %v63_v53 = vmul.f32 %v248_v47, %v338_v1  ;;  %v256_v55 = vunpack.c.l.bf16 %v304_v43  ;;  %307 = vst [vmem:[%s425_s3 + $0x18] sm:$0xff] %v276_v48   ;;  %v64_v57 = vmul.f32 %v249_v50, %v338_v1  ;;  %v257_v59 = vunpack.c.h.bf16 %v304_v43 }
   0xe   :  { %v84_v56 = vadd.f32 %v352_v7, %v61_v49  ;;  %v65_v58 = vmul.f32 %v252_v51, %v338_v1  ;;  %v85_v60 = vadd.f32 %v352_v7, %v62_v52  ;;  %v66_v62 = vmul.f32 %v253_v54, %v338_v1 }
   0xf   :  { %v86_v61 = vadd.f32 %v352_v7, %v63_v53  ;;  %v67_v63 = vmul.f32 %v256_v55, %v338_v1  ;;  %v87_v2 = vadd.f32 %v352_v7, %v64_v57  ;;  %v68_v4 = vmul.f32 %v257_v59, %v338_v1 }
  0x10   :  { %v100_v0 = vmax.f32 %v84_v56, 0.0  ;;  %v88_v3 = vadd.f32 %v352_v7, %v65_v58  ;;  %v101_v5 = vmax.f32 %v85_v60, 0.0  ;;  %v89_v8 = vadd.f32 %v352_v7, %v66_v62 }
  0x11   :  { %v102_v6 = vmax.f32 %v86_v61, 0.0  ;;  %v90_v9 = vadd.f32 %v352_v7, %v67_v63  ;;  %v103_v10 = vmax.f32 %v87_v2, 0.0  ;;  %v91_v12 = vadd.f32 %v352_v7, %v68_v4 }
  0x12   :  { %v104_v11 = vmax.f32 %v88_v3, 0.0  ;;  %v281_v13 = vpack.c.bf16 %v101_v5, %v100_v0  ;;  %v105_v14 = vmax.f32 %v89_v8, 0.0 }
  0x13   :  { %v106_v15 = vmax.f32 %v90_v9, 0.0  ;;  %v286_v16 = vpack.c.bf16 %v103_v10, %v102_v6  ;;  %v107_v17 = vmax.f32 %v91_v12, 0.0 }
  0x14   :  { %308 = vst [vmem:[%s425_s3 + $0x20] sm:$0xff] %v281_v13   ;;  %v291_v1 = vpack.c.bf16 %v105_v14, %v104_v11 }
  0x15   :  { %309 = vst [vmem:[%s425_s3 + $0x28] sm:$0xff] %v286_v16   ;;  %v296_v18 = vpack.c.bf16 %v107_v17, %v106_v15 }
  0x16   :  { %310 = vst [vmem:[%s425_s3 + $0x30] sm:$0xff] %v291_v1  }
  0x17   :  { %311 = vst [vmem:[%s425_s3 + $0x38] sm:$0xff] %v296_v18  }

// kernel: resnet_block_forward.10
= control target key start
LH: loop header
LB: loop body
LE: loop exit
PB: predicated region body
PF: predicated region fallthrough
CT: control target
= control target key end

     0   :  { %vm149_vm0 = vcmask 588800   ;;  %vm174_vm1 = vcmask 1043456   ;;  %s726_s1 = inlined_call_operand.vmem [shape: bf16[72,128], index: 1, kind: input, shape index: {}]   ;;  %s727_s0 = inlined_call_operand.vmem [shape: bf16[128,72], index: 0, kind: input, shape index: {}]   ;;  %s728_s2 = inlined_call_operand.vmem [shape: bf16[128,128], index: 2, kind: output, shape index: {0}]   ;;  %s729_s3 = inlined_call_operand.vmem [shape: f32[8,128], index: 3, kind: output, shape index: {1}]   ;;  %s730_s4 = inlined_call_operand.vmem [shape: f32[8,128], index: 4, kind: output, shape index: {2}]  }
   0x1   :  { %v611_v0 = vld [vmem:[%s726_s1] sm:$0xff]   ;;  %v612_v1 = vld [vmem:[%s726_s1 + $0x8] sm:$0xff]   ;;  %v613_v2 = vld [vmem:[%s726_s1 + $0x10] sm:$0xff]  }
   0x2   :  { %572 = vmatprep.subr.bf16.mxu0 %v611_v0  ;;  %598 = vmatprep.subr.bf16.mxu1 %v611_v0  ;;  %v616_v3 = vld [vmem:[%s727_s0] sm:$0xff]   ;;  %v614_v4 = vld [vmem:[%s726_s1 + $0x18] sm:$0xff]   ;;  %v617_v8 = vld [vmem:[%s727_s0 + $0x8] sm:$0xff]  }
   0x3   :  { %573 = vmatpush3.bf16.msra.mxu0 %v611_v0  ;;  %603 = vmatpush3.bf16.msra.mxu1 %v611_v0  ;;  %v620_v5 = vld [vmem:[%s727_s0 + $0x20] sm:$0xff]   ;;  %v621_v9 = vld [vmem:[%s727_s0 + $0x28] sm:$0xff]   ;;  %v618_v10 = vld [vmem:[%s727_s0 + $0x10] sm:$0xff]  }
   0x4   :  { %574 = vmatprep.subr.bf16.mxu0 %v612_v1  ;;  %599 = vmatprep.subr.bf16.mxu1 %v612_v1  ;;  %v615_v6 = vld [vmem:[%s726_s1 + $0x20] ss:$0 sps:$4 sm:$0xff]   ;;  %v622_v11 = vld [vmem:[%s727_s0 + $0x30] sm:$0xff]   ;;  %v619_v12 = vld [vmem:[%s727_s0 + $0x18] sm:$0xff]  }
   0x5   :  { %582 = vmatprep.mubr.msk.bf16.mxu0 %vm149_vm0, %v616_v3  ;;  %590 = vmatprep.mubr.msk.bf16.mxu1 %vm149_vm0, %v620_v5  ;;  %v176_v7 = vsel %vm174_vm1, %v615_v6, 0  ;;  %v623_v13 = vld [vmem:[%s727_s0 + $0x38] sm:$0xff]  }
   0x7   :  { %575 = vmatpush3.bf16.msra.mxu0 %v612_v1  ;;  %604 = vmatpush3.bf16.msra.mxu1 %v612_v1 }
   0x8   :  { %576 = vmatprep.subr.bf16.mxu0 %v613_v2  ;;  %600 = vmatprep.subr.bf16.mxu1 %v613_v2 }
   0xb   :  { %577 = vmatpush3.bf16.msra.mxu0 %v613_v2  ;;  %605 = vmatpush3.bf16.msra.mxu1 %v613_v2 }
   0xc   :  { %578 = vmatprep.subr.bf16.mxu0 %v614_v4  ;;  %601 = vmatprep.subr.bf16.mxu1 %v614_v4 }
   0xf   :  { %579 = vmatpush3.bf16.msra.mxu0 %v614_v4  ;;  %606 = vmatpush3.bf16.msra.mxu1 %v614_v4 }
  0x10   :  { %608 = vmatprep.subr.msk.bf16.mxu0 %vm174_vm1, %v615_v6  ;;  %609 = vmatprep.subr.msk.bf16.mxu1 %vm174_vm1, %v615_v6 }
  0x13   :  { %581 = vmatpush3.bf16.msra.mxu0 %v176_v7  ;;  %607 = vmatpush3.bf16.msra.mxu1 %v176_v7 }
  0x16   :  { %583 = vmatmul.mubr.msk.bf16.vlgmr.msra.gmra.mrb[0].mxu0 %vm149_vm0, %v617_v8  ;;  %591 = vmatmul.mubr.msk.bf16.vlgmr.msra.gmra.mrb[0].mxu1 %vm149_vm0, %v621_v9 }
  0x17   :  { %586 = vmatprep.mubr.msk.bf16.mxu0 %vm149_vm0, %v618_v10  ;;  %594 = vmatprep.mubr.msk.bf16.mxu1 %vm149_vm0, %v622_v11 }
  0x1e   :  { %587 = vmatmul.mubr.msk.bf16.gmra.mrb[4].mxu0 %vm149_vm0, %v619_v12  ;;  %595 = vmatmul.mubr.msk.bf16.gmra.mrb[4].mxu1 %vm149_vm0, %v623_v13 }
  0xe9   :  { %v584_v14 = vpop.f32.mrb[0].mxu0  ;;  %v592_v15 = vpop.f32.mrb[0].mxu1 }
  0xea   :  { %v212_v16 = vpop.f32.mrb[1].mxu0  ;;  %v244_v17 = vpop.f32.mrb[1].mxu1  ;;  %v382_v29 = vmul.f32 %v584_v14, %v584_v14  ;;  %v390_v1 = vmul.f32 %v592_v15, %v592_v15 }
  0xeb   :  { %v585_v18 = vpop.f32.mrb[2].mxu0  ;;  %v593_v19 = vpop.f32.mrb[2].mxu1  ;;  %v380_v20 = vmul.f32 %v212_v16, %v212_v16  ;;  %v388_v59 = vmul.f32 %v244_v17, %v244_v17 }
  0xec   :  { %v520_v21 = vpack.c.bf16 %v585_v18, %v584_v14  ;;  %v215_v22 = vpop.f32.mrb[3].mxu0  ;;  %v540_v23 = vpack.c.bf16 %v593_v19, %v592_v15  ;;  %v247_v24 = vpop.f32.mrb[3].mxu1  ;;  %v383_v32 = vmul.f32 %v585_v18, %v585_v18  ;;  %v391_v4 = vmul.f32 %v593_v19, %v593_v19 }
  0xed   :  { %v515_v25 = vpack.c.bf16 %v215_v22, %v212_v16  ;;  %v356_v26 = vadd.f32 %v215_v22, %v212_v16  ;;  %v381_v27 = vmul.f32 %v215_v22, %v215_v22  ;;  %v535_v28 = vpack.c.bf16 %v247_v24, %v244_v17 }
  0xee   :  { %552 = vst [vmem:[%s728_s2 + $0x8] sm:$0xff] %v520_v21   ;;  %556 = vst [vmem:[%s728_s2 + $0x28] sm:$0xff] %v540_v23   ;;  %v389_v0 = vmul.f32 %v247_v24, %v247_v24 }
  0xef   :  { %516 = vst [vmem:[%s728_s2] sm:$0xff] %v515_v25   ;;  %v357_v30 = vadd.f32 %v584_v14, %v356_v26  ;;  %v396_v31 = vadd.f32 %v381_v27, %v380_v20  ;;  %555 = vst [vmem:[%s728_s2 + $0x20] sm:$0xff] %v535_v28  }
  0xf1   :  { %v397_v33 = vadd.f32 %v396_v31, %v382_v29  ;;  %v588_v34 = vpop.f32.mrb[4].mxu0  ;;  %v358_v35 = vadd.f32 %v585_v18, %v357_v30  ;;  %v596_v36 = vpop.f32.mrb[4].mxu1 }
  0xf2   :  { %v228_v37 = vpop.f32.mrb[5].mxu0  ;;  %v260_v38 = vpop.f32.mrb[5].mxu1  ;;  %v386_v53 = vmul.f32 %v588_v34, %v588_v34  ;;  %v394_v13 = vmul.f32 %v596_v36, %v596_v36 }
  0xf3   :  { %v359_v39 = vadd.f32 %v358_v35, %v228_v37  ;;  %v384_v40 = vmul.f32 %v228_v37, %v228_v37  ;;  %v398_v41 = vadd.f32 %v397_v33, %v383_v32  ;;  %v589_v42 = vpop.f32.mrb[6].mxu0  ;;  %v597_v43 = vpop.f32.mrb[6].mxu1  ;;  %v392_v7 = vmul.f32 %v260_v38, %v260_v38 }
  0xf4   :  { %v530_v44 = vpack.c.bf16 %v589_v42, %v588_v34  ;;  %v231_v45 = vpop.f32.mrb[7].mxu0  ;;  %v550_v46 = vpack.c.bf16 %v597_v43, %v596_v36  ;;  %v263_v47 = vpop.f32.mrb[7].mxu1  ;;  %v387_v56 = vmul.f32 %v589_v42, %v589_v42 }
  0xf5   :  { %v399_v48 = vadd.f32 %v398_v41, %v384_v40  ;;  %v525_v49 = vpack.c.bf16 %v231_v45, %v228_v37  ;;  %v360_v50 = vadd.f32 %v359_v39, %v231_v45  ;;  %v385_v51 = vmul.f32 %v231_v45, %v231_v45 }
  0xf6   :  { %554 = vst [vmem:[%s728_s2 + $0x18] sm:$0xff] %v530_v44   ;;  %558 = vst [vmem:[%s728_s2 + $0x38] sm:$0xff] %v550_v46   ;;  %v545_v52 = vpack.c.bf16 %v263_v47, %v260_v38  ;;  %v393_v12 = vmul.f32 %v263_v47, %v263_v47 }
  0xf7   :  { %553 = vst [vmem:[%s728_s2 + $0x10] sm:$0xff] %v525_v49   ;;  %v361_v54 = vadd.f32 %v588_v34, %v360_v50  ;;  %v400_v55 = vadd.f32 %v399_v48, %v385_v51 }
  0xf8   :  { %557 = vst [vmem:[%s728_s2 + $0x30] sm:$0xff] %v545_v52  }
  0xf9   :  { %v401_v57 = vadd.f32 %v400_v55, %v386_v53  ;;  %v362_v58 = vadd.f32 %v589_v42, %v361_v54 }
  0xfb   :  { %v363_v60 = vadd.f32 %v362_v58, %v244_v17  ;;  %v402_v61 = vadd.f32 %v401_v57, %v387_v56  ;;  %v395_v17 = vmul.f32 %v597_v43, %v597_v43 }
  0xfd   :  { %v403_v62 = vadd.f32 %v402_v61, %v388_v59  ;;  %v364_v63 = vadd.f32 %v363_v60, %v247_v24 }
  0xff   :  { %v365_v2 = vadd.f32 %v592_v15, %v364_v63  ;;  %v404_v3 = vadd.f32 %v403_v62, %v389_v0 }
 0x101   :  { %v405_v5 = vadd.f32 %v404_v3, %v390_v1  ;;  %v366_v6 = vadd.f32 %v593_v19, %v365_v2 }
 0x103   :  { %v367_v8 = vadd.f32 %v366_v6, %v260_v38  ;;  %v406_v9 = vadd.f32 %v405_v5, %v391_v4 }
 0x105   :  { %v407_v10 = vadd.f32 %v406_v9, %v392_v7  ;;  %v368_v11 = vadd.f32 %v367_v8, %v263_v47 }
 0x107   :  { %v369_v14 = vadd.f32 %v596_v36, %v368_v11  ;;  %v408_v16 = vadd.f32 %v407_v10, %v393_v12 }
 0x109   :  { %v370_v18 = vadd.f32 %v597_v43, %v369_v14  ;;  %v409_v20 = vadd.f32 %v408_v16, %v394_v13 }
 0x10b   :  { %v371_v21 = vrot.slane %v370_v18, 4  ;;  %v410_v22 = vadd.f32 %v409_v20, %v395_v17 }
 0x10d   :  { %v372_v23 = vadd.f32 %v371_v21, %v370_v18  ;;  %v411_v15 = vrot.slane %v410_v22, 4 }
 0x10f   :  { %v373_v24 = vrot.slane %v372_v23, 2  ;;  %v412_v25 = vadd.f32 %v411_v15, %v410_v22 }
 0x111   :  { %v374_v26 = vadd.f32 %v373_v24, %v372_v23  ;;  %v413_v19 = vrot.slane %v412_v25, 2 }
 0x113   :  { %v375_v27 = vrot.slane %v374_v26, 1  ;;  %v414_v28 = vadd.f32 %v413_v19, %v412_v25 }
 0x115   :  { %v376_v29 = vadd.f32 %v375_v27, %v374_v26  ;;  %v415_v30 = vrot.slane %v414_v28, 1 }
 0x117   :  { %v416_v31 = vadd.f32 %v415_v30, %v414_v28  ;;  %378 = vst [vmem:[%s729_s3] sm:$0xff] %v376_v29 }
 0x119   :  { %418 = vst [vmem:[%s730_s4] sm:$0xff] %v416_v31 }

// kernel: resnet_block_forward.11
= control target key start
LH: loop header
LB: loop body
LE: loop exit
PB: predicated region body
PF: predicated region fallthrough
CT: control target
= control target key end

     0   :  { %s422_s0 = inlined_call_operand.vmem [shape: bf16[128,128], index: 0, kind: input, shape index: {}]   ;;  %s423_s1 = inlined_call_operand.vmem [shape: f32[1,128], index: 1, kind: input, shape index: {}]   ;;  %s424_s2 = inlined_call_operand.vmem [shape: f32[1,128], index: 2, kind: input, shape index: {}]   ;;  %s425_s3 = inlined_call_operand.vmem [shape: bf16[128,128], index: 3, kind: input, shape index: {}]   ;;  %s426_s4 = inlined_call_operand.vmem [shape: f32[128,128], index: 4, kind: output, shape index: {}]  }
   0x1   :  { %v182_v0 = vld [vmem:[%s422_s0] sm:$0xff]   ;;  %v245_v5 = vld [vmem:[%s422_s0 + $0x8] sm:$0xff]   ;;  %v246_v12 = vld [vmem:[%s422_s0 + $0x10] sm:$0xff]  }
   0x2   :  { %v290_v1 = vld [vmem:[%s423_s1] ss:$0 sm:$0xff]  ;;  %v183_v2 = vunpack.c.l.bf16 %v182_v0  ;;  %v184_v4 = vunpack.c.h.bf16 %v182_v0  ;;  %v252_v6 = vld [vmem:[%s425_s3 + $0x8] sm:$0xff]   ;;  %v187_v10 = vunpack.c.l.bf16 %v245_v5  ;;  %v253_v13 = vld [vmem:[%s425_s3 + $0x10] sm:$0xff]   ;;  %v188_v16 = vunpack.c.h.bf16 %v245_v5 }
   0x3   :  { %v214_v3 = vld [vmem:[%s425_s3] sm:$0xff]   ;;  %v219_v11 = vunpack.c.l.bf16 %v252_v6  ;;  %v220_v17 = vunpack.c.h.bf16 %v252_v6  ;;  %v247_v18 = vld [vmem:[%s422_s0 + $0x18] sm:$0xff]   ;;  %v191_v20 = vunpack.c.l.bf16 %v246_v12  ;;  %v223_v21 = vunpack.c.l.bf16 %v253_v13  ;;  %v249_v54 = vld [vmem:[%s422_s0 + $0x28] sm:$0xff]  }
   0x4   :  { %v304_v7 = vld [vmem:[%s424_s2] ss:$0 sm:$0xff]  ;;  %v215_v8 = vunpack.c.l.bf16 %v214_v3  ;;  %v216_v9 = vunpack.c.h.bf16 %v214_v3  ;;  %v56_v14 = vmul.f32 %v183_v2, %v290_v1  ;;  %v57_v15 = vmul.f32 %v184_v4, %v290_v1  ;;  %v254_v23 = vld [vmem:[%s425_s3 + $0x18] sm:$0xff]   ;;  %v256_v55 = vld [vmem:[%s425_s3 + $0x28] sm:$0xff]  }
   0x5   :  { %v58_v19 = vmul.f32 %v187_v10, %v290_v1  ;;  %v192_v22 = vunpack.c.h.bf16 %v246_v12  ;;  %v59_v26 = vmul.f32 %v188_v16, %v290_v1  ;;  %v224_v27 = vunpack.c.h.bf16 %v253_v13  ;;  %v248_v40 = vld [vmem:[%s422_s0 + $0x20] sm:$0xff]   ;;  %v250_v0 = vld [vmem:[%s422_s0 + $0x30] sm:$0xff]   ;;  %v251_v16 = vld [vmem:[%s422_s0 + $0x38] sm:$0xff]  }
   0x6   :  { %v79_v24 = vadd.f32 %v304_v7, %v56_v14  ;;  %v80_v25 = vadd.f32 %v304_v7, %v57_v15  ;;  %v60_v29 = vmul.f32 %v191_v20, %v290_v1  ;;  %v195_v31 = vunpack.c.l.bf16 %v247_v18  ;;  %v255_v45 = vld [vmem:[%s425_s3 + $0x20] sm:$0xff]   ;;  %v257_v2 = vld [vmem:[%s425_s3 + $0x30] sm:$0xff]  }
   0x7   :  { %v81_v28 = vadd.f32 %v304_v7, %v58_v19  ;;  %v61_v30 = vmul.f32 %v192_v22, %v290_v1  ;;  %v82_v34 = vadd.f32 %v304_v7, %v59_v26  ;;  %v227_v35 = vunpack.c.l.bf16 %v254_v23 }
   0x8   :  { %v127_v32 = vadd.f32 %v215_v8, %v79_v24  ;;  %v128_v33 = vadd.f32 %v216_v9, %v80_v25  ;;  %v83_v37 = vadd.f32 %v304_v7, %v60_v29  ;;  %v62_v39 = vmul.f32 %v195_v31, %v290_v1 }
   0x9   :  { %v129_v36 = vadd.f32 %v219_v11, %v81_v28  ;;  %v84_v38 = vadd.f32 %v304_v7, %v61_v30  ;;  %v130_v43 = vadd.f32 %v220_v17, %v82_v34  ;;  %v196_v44 = vunpack.c.h.bf16 %v247_v18 }
   0xa   :  { %v143_v41 = vmax.f32 %v127_v32, 0.0  ;;  %v144_v42 = vmax.f32 %v128_v33, 0.0  ;;  %v131_v47 = vadd.f32 %v223_v21, %v83_v37  ;;  %v85_v49 = vadd.f32 %v304_v7, %v62_v39  ;;  %v258_v21 = vld [vmem:[%s425_s3 + $0x38] sm:$0xff]  }
   0xb   :  { %v145_v46 = vmax.f32 %v129_v36, 0.0  ;;  %v132_v48 = vadd.f32 %v224_v27, %v84_v38  ;;  %v146_v50 = vmax.f32 %v130_v43, 0.0  ;;  %v63_v51 = vmul.f32 %v196_v44, %v290_v1 }
   0xc   :  { %159 = vst [vmem:[%s426_s4] sm:$0xff] %v143_v41  ;;  %160 = vst [vmem:[%s426_s4 + $0x8] sm:$0xff] %v144_v42  ;;  %v228_v52 = vunpack.c.h.bf16 %v254_v23  ;;  %v199_v53 = vunpack.c.l.bf16 %v248_v40  ;;  %v147_v56 = vmax.f32 %v131_v47, 0.0  ;;  %v133_v58 = vadd.f32 %v227_v35, %v85_v49 }
   0xd   :  { %161 = vst [vmem:[%s426_s4 + $0x10] sm:$0xff] %v145_v46  ;;  %v148_v57 = vmax.f32 %v132_v48, 0.0  ;;  %v231_v59 = vunpack.c.l.bf16 %v255_v45  ;;  %162 = vst [vmem:[%s426_s4 + $0x18] sm:$0xff] %v146_v50  ;;  %v86_v60 = vadd.f32 %v304_v7, %v63_v51  ;;  %v200_v62 = vunpack.c.h.bf16 %v248_v40 }
   0xe   :  { %v64_v61 = vmul.f32 %v199_v53, %v290_v1  ;;  %v232_v63 = vunpack.c.h.bf16 %v255_v45  ;;  %163 = vst [vmem:[%s426_s4 + $0x20] sm:$0xff] %v147_v56  ;;  %v149_v3 = vmax.f32 %v133_v58, 0.0  ;;  %v203_v4 = vunpack.c.l.bf16 %v249_v54 }
   0xf   :  { %164 = vst [vmem:[%s426_s4 + $0x28] sm:$0xff] %v148_v57  ;;  %v235_v5 = vunpack.c.l.bf16 %v256_v55  ;;  %v204_v6 = vunpack.c.h.bf16 %v249_v54  ;;  %v134_v8 = vadd.f32 %v228_v52, %v86_v60  ;;  %v65_v10 = vmul.f32 %v200_v62, %v290_v1 }
  0x10   :  { %v87_v9 = vadd.f32 %v304_v7, %v64_v61  ;;  %v236_v11 = vunpack.c.h.bf16 %v256_v55  ;;  %165 = vst [vmem:[%s426_s4 + $0x30] sm:$0xff] %v149_v3  ;;  %v66_v12 = vmul.f32 %v203_v4, %v290_v1  ;;  %v207_v14 = vunpack.c.l.bf16 %v250_v0 }
  0x11   :  { %v67_v13 = vmul.f32 %v204_v6, %v290_v1  ;;  %v239_v15 = vunpack.c.l.bf16 %v257_v2  ;;  %v150_v17 = vmax.f32 %v134_v8, 0.0  ;;  %v88_v19 = vadd.f32 %v304_v7, %v65_v10 }
  0x12   :  { %v135_v18 = vadd.f32 %v231_v59, %v87_v9  ;;  %v208_v20 = vunpack.c.h.bf16 %v250_v0  ;;  %v89_v22 = vadd.f32 %v304_v7, %v66_v12  ;;  %v68_v24 = vmul.f32 %v207_v14, %v290_v1 }
  0x13   :  { %v90_v23 = vadd.f32 %v304_v7, %v67_v13  ;;  %v240_v25 = vunpack.c.h.bf16 %v257_v2  ;;  %166 = vst [vmem:[%s426_s4 + $0x38] sm:$0xff] %v150_v17  ;;  %v136_v27 = vadd.f32 %v232_v63, %v88_v19  ;;  %v211_v29 = vunpack.c.l.bf16 %v251_v16 }
  0x14   :  { %v151_v26 = vmax.f32 %v135_v18, 0.0  ;;  %v69_v28 = vmul.f32 %v208_v20, %v290_v1  ;;  %v137_v30 = vadd.f32 %v235_v5, %v89_v22  ;;  %v91_v32 = vadd.f32 %v304_v7, %v68_v24 }
  0x15   :  { %v138_v31 = vadd.f32 %v236_v11, %v90_v23  ;;  %v243_v33 = vunpack.c.l.bf16 %v258_v21  ;;  %v152_v34 = vmax.f32 %v136_v27, 0.0  ;;  %v70_v36 = vmul.f32 %v211_v29, %v290_v1 }
  0x16   :  { %167 = vst [vmem:[%s426_s4 + $0x40] sm:$0xff] %v151_v26  ;;  %v92_v35 = vadd.f32 %v304_v7, %v69_v28  ;;  %v212_v37 = vunpack.c.h.bf16 %v251_v16  ;;  %v153_v38 = vmax.f32 %v137_v30, 0.0  ;;  %v139_v40 = vadd.f32 %v239_v15, %v91_v32 }
  0x17   :  { %v154_v39 = vmax.f32 %v138_v31, 0.0  ;;  %168 = vst [vmem:[%s426_s4 + $0x48] sm:$0xff] %v152_v34  ;;  %v93_v42 = vadd.f32 %v304_v7, %v70_v36  ;;  %v244_v44 = vunpack.c.h.bf16 %v258_v21 }
  0x18   :  { %v140_v41 = vadd.f32 %v240_v25, %v92_v35  ;;  %v71_v43 = vmul.f32 %v212_v37, %v290_v1  ;;  %169 = vst [vmem:[%s426_s4 + $0x50] sm:$0xff] %v153_v38  ;;  %v155_v45 = vmax.f32 %v139_v40, 0.0 }
  0x19   :  { %170 = vst [vmem:[%s426_s4 + $0x58] sm:$0xff] %v154_v39  ;;  %v141_v47 = vadd.f32 %v243_v33, %v93_v42 }
  0x1a   :  { %v156_v46 = vmax.f32 %v140_v41, 0.0  ;;  %v94_v48 = vadd.f32 %v304_v7, %v71_v43  ;;  %171 = vst [vmem:[%s426_s4 + $0x60] sm:$0xff] %v155_v45 }
  0x1b   :  { %v157_v1 = vmax.f32 %v141_v47, 0.0 }
  0x1c   :  { %172 = vst [vmem:[%s426_s4 + $0x68] sm:$0xff] %v156_v46  ;;  %v142_v49 = vadd.f32 %v244_v44, %v94_v48 }
  0x1d   :  { %173 = vst [vmem:[%s426_s4 + $0x70] sm:$0xff] %v157_v1 }
  0x1e   :  { %v158_v50 = vmax.f32 %v142_v49, 0.0 }
  0x20   :  { %174 = vst [vmem:[%s426_s4 + $0x78] sm:$0xff] %v158_v50 }

</bundles_post_ra>
